<compile_context>
chip_gen: v6e
topology: v6e:2x2x1
jax: 0.10.0
libtpu: 0.0.40
codegen_flags: <defaults>
</compile_context>

<pallas_src>
import functools
import math

import jax
import jax.numpy as jnp
from jax import lax
from jax.experimental import pallas as pl
from jax.experimental.pallas import tpu as pltpu


@functools.lru_cache(maxsize=None)
def _get_vmem_limit():
    """Generation-aware VMEM limit: ~75% of physical, capped at 100 MiB.
    v5e/v6e (128 MiB physical) -> 96 MiB; v7x (64 MiB physical) -> 48 MiB."""
    try:
        cap = int(pltpu.get_tpu_info().vmem_capacity_bytes)
    except Exception:
        cap = 64 * 1024 * 1024
    return max(32 * 1024 * 1024, min(cap * 3 // 4, 100 * 1024 * 1024))


def _row_tile(m, target=512):
    """Largest row tile <= target that is a multiple of 8 and divides m (else m itself)."""
    if m <= target:
        return m
    t = target
    while t >= 8:
        if m % t == 0:
            return t
        t -= 8
    return m


def _dff_tile(dff, target=1024):
    """DFF chunk: full DFF if small, else the largest multiple of 128 <= target dividing DFF."""
    if dff <= target:
        return dff
    t = (target // 128) * 128
    while t >= 128:
        if dff % t == 0:
            return t
        t -= 128
    return dff


def _const_spec(block_shape, index_map, single_buffer=True):
    """BlockSpec for an operand whose block index never changes across the grid.
    With single_buffer=True, request a single VMEM buffer (pl.Buffered(1)) instead
    of the default two; falls back to a plain BlockSpec on older JAX."""
    if single_buffer:
        try:
            return pl.BlockSpec(block_shape, index_map, pipeline_mode=pl.Buffered(1))
        except Exception:
            pass
    return pl.BlockSpec(block_shape, index_map)


def _layernorm_f32(x, a, b, eps):
    """a*(x-mean)/(std_unbiased + eps) + b, computed in f32 (matches torch .std())."""
    d = x.shape[-1]
    mean = jnp.mean(x, axis=-1, keepdims=True)
    var = jnp.sum((x - mean) ** 2, axis=-1, keepdims=True) / (d - 1)
    return a * (x - mean) / (jnp.sqrt(var) + eps) + b


# ---- Kernel A: LN1 + fused QKV + multi-head attention + Wo projection + residual ----

def _attn_block_kernel(x_ref, mask_ref, a_ref, b_ref, wqkv_ref, bqkv_ref,
                       wo_ref, bo_ref, o_ref, *, num_heads, d_model, scale, eps):
    x = x_ref[0].astype(jnp.float32)                         # (L, D)
    n = _layernorm_f32(x, a_ref[...], b_ref[...], eps)       # (L, D)
    # fused QKV projection; the (L, 3D) slab never leaves VMEM / vregs
    qkv = jnp.dot(n, wqkv_ref[...], preferred_element_type=jnp.float32) + bqkv_ref[...]
    # additive mask bias computed in-kernel on the VPU (0 = keep, -1e9 = masked);
    # free filler under the MXU, saves a (B,L,L) HBM write+re-read per call.
    bias = (mask_ref[0].astype(jnp.float32) - 1.0) * 1e9
    wo = wo_ref[...]                                         # (D, D)
    L = x.shape[0]
    dk = d_model // num_heads
    acc = jnp.zeros((L, d_model), jnp.float32)
    for h in range(num_heads):                               # static unroll over heads
        lo = h * dk
        qh = qkv[:, lo:lo + dk]
        kh = qkv[:, d_model + lo:d_model + lo + dk]
        vh = qkv[:, 2 * d_model + lo:2 * d_model + lo + dk]
        # contract over dk on both operands: K transpose folded into the matmul
        s = lax.dot_general(qh, kh, (((1,), (1,)), ((), ())),
                            preferred_element_type=jnp.float32) * scale + bias
        s = s - jnp.max(s, axis=-1, keepdims=True)
        p = jnp.exp(s)
        # exact reciprocal kept so the strict 1e-4 check vs the f32 reference holds
        p = p * pl.reciprocal(jnp.sum(p, axis=-1, keepdims=True), approx=False)
        ctx = jnp.dot(p, vh, preferred_element_type=jnp.float32)           # (L, dk)
        # concat_h(ctx_h) @ Wo == sum_h ctx_h @ Wo[h*dk:(h+1)*dk, :]   (no concat/transpose)
        acc = acc + jnp.dot(ctx, wo[lo:lo + dk, :], preferred_element_type=jnp.float32)
    out = acc + bo_ref[...] + x
    o_ref[0] = out.astype(o_ref.dtype)                       # lane-dense (L, D) store


def attention_sublayer(x, mask, ln_a, ln_b, w_qkv, b_qkv, wo, bo, num_heads,
                       eps=1e-6, single_buffer=True):
    B, L, D = x.shape
    dk = D // num_heads
    scale = 1.0 / math.sqrt(dk)
    return pl.pallas_call(
        functools.partial(_attn_block_kernel, num_heads=num_heads, d_model=D,
                          scale=scale, eps=eps),
        out_shape=jax.ShapeDtypeStruct((B, L, D), x.dtype),
        grid=(B,),
        in_specs=[
            pl.BlockSpec((1, L, D), lambda b: (b, 0, 0)),
            pl.BlockSpec((1, L, L), lambda b: (b, 0, 0)),     # raw mask; bias built in-kernel
            _const_spec((1, D), lambda b: (0, 0), single_buffer),
            _const_spec((1, D), lambda b: (0, 0), single_buffer),
            _const_spec((D, 3 * D), lambda b: (0, 0), single_buffer),
            _const_spec((1, 3 * D), lambda b: (0, 0), single_buffer),
            _const_spec((D, D), lambda b: (0, 0), single_buffer),
            _const_spec((1, D), lambda b: (0, 0), single_buffer),
        ],
        out_specs=pl.BlockSpec((1, L, D), lambda b: (b, 0, 0)),
        compiler_params=pltpu.CompilerParams(
            dimension_semantics=("parallel",),
            vmem_limit_bytes=_get_vmem_limit()),
    )(x, mask, ln_a.reshape(1, D), ln_b.reshape(1, D), w_qkv,
      b_qkv.reshape(1, 3 * D), wo, bo.reshape(1, D))


# ---- Kernel B: LN2 + FFN (W1, ReLU, W2) streamed over DFF + residual ----

def _ln_ffn_kernel(x_ref, a_ref, b_ref, w1_ref, b1_ref, w2_ref, b2_ref,
                   o_ref, n_scr, acc_scr, *, eps):
    j = pl.program_id(1)

    @pl.when(j == 0)
    def _():
        x = x_ref[...].astype(jnp.float32)
        n_scr[...] = _layernorm_f32(x, a_ref[...], b_ref[...], eps)
        acc_scr[...] = x + b2_ref[...]             # residual + output bias

    h = jnp.dot(n_scr[...], w1_ref[...], preferred_element_type=jnp.float32) + b1_ref[...]
    h = jnp.maximum(h, 0.0)                        # (tm, t_dff) chunk, stays in VMEM/vregs
    acc_scr[...] += jnp.dot(h, w2_ref[...], preferred_element_type=jnp.float32)

    @pl.when(j == pl.num_programs(1) - 1)
    def _():
        o_ref[...] = acc_scr[...].astype(o_ref.dtype)   # lane-dense (tm, D) store


def ffn_sublayer(x2d, ln_a, ln_b, w1, b1, w2, b2, eps=1e-6,
                 row_tile=512, dff_tile=1024, single_buffer=True):
    M, D = x2d.shape
    DFF = w1.shape[1]
    tm = _row_tile(M, row_tile)
    td = _dff_tile(DFF, dff_tile)
    return pl.pallas_call(
        functools.partial(_ln_ffn_kernel, eps=eps),
        out_shape=jax.ShapeDtypeStruct((M, D), x2d.dtype),
        grid=(M // tm, DFF // td),
        in_specs=[
            pl.BlockSpec((tm, D), lambda i, j: (i, 0)),
            _const_spec((1, D), lambda i, j: (0, 0), single_buffer),
            _const_spec((1, D), lambda i, j: (0, 0), single_buffer),
            pl.BlockSpec((D, td), lambda i, j: (0, j)),      # W1 streamed over DFF
            pl.BlockSpec((1, td), lambda i, j: (0, j)),
            pl.BlockSpec((td, D), lambda i, j: (j, 0)),      # W2 streamed over DFF
            _const_spec((1, D), lambda i, j: (0, 0), single_buffer),
        ],
        out_specs=pl.BlockSpec((tm, D), lambda i, j: (i, 0)),
        scratch_shapes=[pltpu.VMEM((tm, D), jnp.float32),     # LN2(x) cache
                        pltpu.VMEM((tm, D), jnp.float32)],    # f32 accumulator
        compiler_params=pltpu.CompilerParams(
            dimension_semantics=("parallel", "arbitrary"),
            vmem_limit_bytes=_get_vmem_limit()),
    )(x2d, ln_a.reshape(1, D), ln_b.reshape(1, D), w1, b1.reshape(1, DFF),
      w2, b2.reshape(1, D))


# ------------------------------- Forward pass --------------------------------

def prepare_params(params):
    """Pre-fuse Q/K/V projection weights once (one (D,3D) matmul instead of three)."""
    p = dict(params)
    p["w_qkv"] = jnp.concatenate([params["wq"], params["wk"], params["wv"]], axis=1)
    p["b_qkv"] = jnp.concatenate([params["bq"], params["bk"], params["bv"]], axis=0)
    return p


def _forward_impl(att, mask, params, single_buffer):
    x = att
    B, L, D = x.shape
    H = params["h"]
    # ---- sublayer[0]: x + Wo * Attn(Wqkv * LN1(x), mask) ----  (QKV slab never hits HBM)
    x = attention_sublayer(x, mask, params["ln1_a"], params["ln1_b"],
                           params["w_qkv"], params["b_qkv"],
                           params["wo"], params["bo"], H,
                           single_buffer=single_buffer)
    # ---- sublayer[1]: x + W2 * relu(W1 * LN2(x)) ----         (DFF streamed, not resident)
    x2 = ffn_sublayer(x.reshape(B * L, D), params["ln2_a"], params["ln2_b"],
                      params["w1"], params["b1"], params["w2"], params["b2"],
                      single_buffer=single_buffer)
    return x2.reshape(B, L, D)


def encoder_layer_forward(fc_feats, att, word_feats, attr_feats, boxes_feats, mask, params):
    # fc_feats / word_feats / attr_feats / boxes_feats are unused, exactly as in the
    # PyTorch EncoderLayer.forward.
    # TODO(synk): dropout is treated as identity (inference / p=0).
    try:
        return _forward_impl(att, mask, params, single_buffer=True)
    except Exception:
        # Fallback for JAX builds that reject single-buffered (pl.Buffered(1)) specs.
        return _forward_impl(att, mask, params, single_buffer=False)


# ------------------------------- Reference ----------------------------------

def reference_forward(att, mask, p):
    def ln(x, a, b, eps=1e-6):
        mean = x.mean(-1, keepdims=True)
        var = ((x - mean) ** 2).sum(-1, keepdims=True) / (x.shape[-1] - 1)
        return a * (x - mean) / (jnp.sqrt(var) + eps) + b

    def lin(z, w, b):
        return z @ w + b

    B, L, D = att.shape
    H = p["h"]
    dk = D // H
    x = att

    n = ln(x, p["ln1_a"], p["ln1_b"])
    q = lin(n, p["wq"], p["bq"]).reshape(B, L, H, dk).transpose(0, 2, 1, 3)
    k = lin(n, p["wk"], p["bk"]).reshape(B, L, H, dk).transpose(0, 2, 1, 3)
    v = lin(n, p["wv"], p["bv"]).reshape(B, L, H, dk).transpose(0, 2, 1, 3)
    s = jnp.einsum("bhqd,bhkd->bhqk", q, k) / math.sqrt(dk)
    s = jnp.where(mask[:, None, :, :] == 0, -1e9, s)
    a = jax.nn.softmax(s, axis=-1)
    o = jnp.einsum("bhqk,bhkd->bhqd", a, v).transpose(0, 2, 1, 3).reshape(B, L, D)
    x = x + lin(o, p["wo"], p["bo"])

    n = ln(x, p["ln2_a"], p["ln2_b"])
    ff = lin(jax.nn.relu(lin(n, p["w1"], p["b1"])), p["w2"], p["b2"])
    return x + ff


# --------------------------------- Main --------------------------------------

if __name__ == "__main__":
    B, L, D, H, DFF = 2, 8, 32, 4, 64
    key = jax.random.PRNGKey(0)
    ks = jax.random.split(key, 8)

    def w(k, shape, scale=0.05):
        return (scale * jax.random.normal(k, shape)).astype(jnp.float32)

    params = {
        "h": H,
        "ln1_a": jnp.ones((D,), jnp.float32),
        "ln1_b": jnp.zeros((D,), jnp.float32),
        "ln2_a": jnp.ones((D,), jnp.float32),
        "ln2_b": jnp.zeros((D,), jnp.float32),
        "wq": w(ks[0], (D, D)), "bq": jnp.zeros((D,), jnp.float32),
        "wk": w(ks[1], (D, D)), "bk": jnp.zeros((D,), jnp.float32),
        "wv": w(ks[2], (D, D)), "bv": jnp.zeros((D,), jnp.float32),
        "wo": w(ks[3], (D, D)), "bo": jnp.zeros((D,), jnp.float32),
        "w1": w(ks[4], (D, DFF)), "b1": jnp.zeros((DFF,), jnp.float32),
        "w2": w(ks[5], (DFF, D)), "b2": jnp.zeros((D,), jnp.float32),
    }
    params = prepare_params(params)

    att = jax.random.normal(ks[6], (B, L, D), dtype=jnp.float32)
    # attention mask: 1 = attend, 0 = masked; second batch masks its last 2 keys
    mask = jnp.ones((B, L, L), jnp.float32).at[1, :, L - 2:].set(0.0)

    out = encoder_layer_forward(None, att, None, None, None, mask, params)
    out = jax.block_until_ready(out)

    ref = reference_forward(att, mask, params)
    assert out.shape == (B, L, D)
    assert jnp.allclose(out, ref, atol=1e-4, rtol=1e-4), "mismatch vs pure-JAX reference"

    print("KERNEL_OK")
</pallas_src>

<mosaic_0001>
module attributes {stable_mosaic.version = 11 : i64} {
  func.func @_attn_block_kernel(%arg0: i32, %arg1: memref<1x8x32xf32, #tpu.memory_space<vmem>>, %arg2: memref<1x8x8xf32, #tpu.memory_space<vmem>>, %arg3: memref<1x32xf32, #tpu.memory_space<vmem>>, %arg4: memref<1x32xf32, #tpu.memory_space<vmem>>, %arg5: memref<32x96xf32, #tpu.memory_space<vmem>>, %arg6: memref<1x96xf32, #tpu.memory_space<vmem>>, %arg7: memref<32x32xf32, #tpu.memory_space<vmem>>, %arg8: memref<1x32xf32, #tpu.memory_space<vmem>>, %arg9: memref<1x8x32xf32, #tpu.memory_space<vmem>>) attributes {dimension_semantics = [#tpu.dimension_semantics<parallel>], iteration_bounds = array<i64: 2>, scalar_prefetch = 0 : i64, scratch_operands = 0 : i64, tpu.core_type = #tpu.core_type<tc>, window_params = [{transform_indices = @transform_0, window_bounds = array<i64: 1, 8, 32>}, {transform_indices = @transform_1, window_bounds = array<i64: 1, 8, 8>}, {pipeline_mode = #tpu.pipeline_mode<synchronous>, transform_indices = @transform_2, window_bounds = array<i64: 1, 32>}, {pipeline_mode = #tpu.pipeline_mode<synchronous>, transform_indices = @transform_3, window_bounds = array<i64: 1, 32>}, {pipeline_mode = #tpu.pipeline_mode<synchronous>, transform_indices = @transform_4, window_bounds = array<i64: 32, 96>}, {pipeline_mode = #tpu.pipeline_mode<synchronous>, transform_indices = @transform_5, window_bounds = array<i64: 1, 96>}, {pipeline_mode = #tpu.pipeline_mode<synchronous>, transform_indices = @transform_6, window_bounds = array<i64: 32, 32>}, {pipeline_mode = #tpu.pipeline_mode<synchronous>, transform_indices = @transform_7, window_bounds = array<i64: 1, 32>}, {transform_indices = @transform_8, window_bounds = array<i64: 1, 8, 32>}]} {
    %c0 = arith.constant 0 : index
    %c0_0 = arith.constant 0 : index
    %c0_1 = arith.constant 0 : index
    %0 = vector.load %arg1[%c0, %c0_0, %c0_1] : memref<1x8x32xf32, #tpu.memory_space<vmem>>, vector<1x8x32xf32>
    %1 = vector.shape_cast %0 : vector<1x8x32xf32> to vector<8x32xf32>
    %c0_2 = arith.constant 0 : index
    %c0_3 = arith.constant 0 : index
    %2 = vector.load %arg3[%c0_2, %c0_3] : memref<1x32xf32, #tpu.memory_space<vmem>>, vector<1x32xf32>
    %c0_4 = arith.constant 0 : index
    %c0_5 = arith.constant 0 : index
    %3 = vector.load %arg4[%c0_4, %c0_5] : memref<1x32xf32, #tpu.memory_space<vmem>>, vector<1x32xf32>
    %cst = arith.constant dense<0.000000e+00> : vector<8xf32>
    %4 = vector.multi_reduction <add>, %1, %cst [1] : vector<8x32xf32> to vector<8xf32>
    %5 = vector.shape_cast %4 : vector<8xf32> to vector<8x1xf32>
    %cst_6 = arith.constant 3.200000e+01 : f32
    %6 = vector.broadcast %cst_6 : f32 to vector<8x1xf32>
    %7 = arith.divf %5, %6 : vector<8x1xf32>
    %8 = vector.broadcast %7 : vector<8x1xf32> to vector<8x32xf32>
    %9 = arith.subf %1, %8 : vector<8x32xf32>
    %10 = arith.mulf %9, %9 : vector<8x32xf32>
    %cst_7 = arith.constant dense<0.000000e+00> : vector<8xf32>
    %11 = vector.multi_reduction <add>, %10, %cst_7 [1] : vector<8x32xf32> to vector<8xf32>
    %12 = vector.shape_cast %11 : vector<8xf32> to vector<8x1xf32>
    %cst_8 = arith.constant 3.100000e+01 : f32
    %13 = vector.broadcast %cst_8 : f32 to vector<8x1xf32>
    %14 = arith.divf %12, %13 : vector<8x1xf32>
    %15 = vector.broadcast %7 : vector<8x1xf32> to vector<8x32xf32>
    %16 = arith.subf %1, %15 : vector<8x32xf32>
    %17 = vector.broadcast %2 : vector<1x32xf32> to vector<8x32xf32>
    %18 = arith.mulf %17, %16 : vector<8x32xf32>
    %19 = math.sqrt %14 : vector<8x1xf32>
    %cst_9 = arith.constant 9.99999997E-7 : f32
    %20 = vector.broadcast %cst_9 : f32 to vector<8x1xf32>
    %21 = arith.addf %19, %20 : vector<8x1xf32>
    %22 = vector.broadcast %21 : vector<8x1xf32> to vector<8x32xf32>
    %23 = arith.divf %18, %22 : vector<8x32xf32>
    %24 = vector.broadcast %3 : vector<1x32xf32> to vector<8x32xf32>
    %25 = arith.addf %23, %24 : vector<8x32xf32>
    %c0_10 = arith.constant 0 : index
    %c0_11 = arith.constant 0 : index
    %26 = vector.load %arg5[%c0_10, %c0_11] : memref<32x96xf32, #tpu.memory_space<vmem>>, vector<32x96xf32>
    %cst_12 = arith.constant dense<0.000000e+00> : vector<8x96xf32>
    %27 = tpu.matmul %25, %26, %cst_12 {dimension_numbers = #tpu.dot_dimension_numbers<[1], [0], [0], [1], [0, 0, 1, 1], [], []>} : vector<8x32xf32>, vector<32x96xf32>, vector<8x96xf32> -> vector<8x96xf32>
    %c0_13 = arith.constant 0 : index
    %c0_14 = arith.constant 0 : index
    %28 = vector.load %arg6[%c0_13, %c0_14] : memref<1x96xf32, #tpu.memory_space<vmem>>, vector<1x96xf32>
    %29 = vector.broadcast %28 : vector<1x96xf32> to vector<8x96xf32>
    %30 = arith.addf %27, %29 : vector<8x96xf32>
    %c0_15 = arith.constant 0 : index
    %c0_16 = arith.constant 0 : index
    %c0_17 = arith.constant 0 : index
    %31 = vector.load %arg2[%c0_15, %c0_16, %c0_17] : memref<1x8x8xf32, #tpu.memory_space<vmem>>, vector<1x8x8xf32>
    %32 = vector.shape_cast %31 : vector<1x8x8xf32> to vector<8x8xf32>
    %cst_18 = arith.constant 1.000000e+00 : f32
    %33 = vector.broadcast %cst_18 : f32 to vector<8x8xf32>
    %34 = arith.subf %32, %33 : vector<8x8xf32>
    %cst_19 = arith.constant 1.000000e+09 : f32
    %35 = vector.broadcast %cst_19 : f32 to vector<8x8xf32>
    %36 = arith.mulf %34, %35 : vector<8x8xf32>
    %c0_20 = arith.constant 0 : index
    %c0_21 = arith.constant 0 : index
    %37 = vector.load %arg7[%c0_20, %c0_21] : memref<32x32xf32, #tpu.memory_space<vmem>>, vector<32x32xf32>
    %cst_22 = arith.constant 0.000000e+00 : f32
    %38 = vector.broadcast %cst_22 : f32 to vector<8x32xf32>
    %39 = vector.extract_strided_slice %30 {offsets = [0, 0], sizes = [8, 8], strides = [1, 1]} : vector<8x96xf32> to vector<8x8xf32>
    %40 = vector.extract_strided_slice %30 {offsets = [0, 32], sizes = [8, 8], strides = [1, 1]} : vector<8x96xf32> to vector<8x8xf32>
    %41 = vector.extract_strided_slice %30 {offsets = [0, 64], sizes = [8, 8], strides = [1, 1]} : vector<8x96xf32> to vector<8x8xf32>
    %cst_23 = arith.constant dense<0.000000e+00> : vector<8x8xf32>
    %42 = tpu.matmul %39, %40, %cst_23 {dimension_numbers = #tpu.dot_dimension_numbers<[1], [1], [0], [0], [0, 0, 1, 0], [], []>} : vector<8x8xf32>, vector<8x8xf32>, vector<8x8xf32> -> vector<8x8xf32>
    %cst_24 = arith.constant 0.353553385 : f32
    %43 = vector.broadcast %cst_24 : f32 to vector<8x8xf32>
    %44 = arith.mulf %42, %43 : vector<8x8xf32>
    %45 = arith.addf %44, %36 : vector<8x8xf32>
    %cst_25 = arith.constant dense<0xFF800000> : vector<8xf32>
    %46 = vector.multi_reduction <maximumf>, %45, %cst_25 [1] : vector<8x8xf32> to vector<8xf32>
    %47 = vector.shape_cast %46 : vector<8xf32> to vector<8x1xf32>
    %48 = vector.broadcast %47 : vector<8x1xf32> to vector<8x8xf32>
    %49 = arith.subf %45, %48 : vector<8x8xf32>
    %50 = math.exp %49 : vector<8x8xf32>
    %cst_26 = arith.constant dense<0.000000e+00> : vector<8xf32>
    %51 = vector.multi_reduction <add>, %50, %cst_26 [1] : vector<8x8xf32> to vector<8xf32>
    %52 = vector.shape_cast %51 : vector<8xf32> to vector<8x1xf32>
    %53 = tpu.reciprocal %52 : vector<8x1xf32> -> vector<8x1xf32>
    %54 = vector.broadcast %53 : vector<8x1xf32> to vector<8x8xf32>
    %55 = arith.mulf %50, %54 : vector<8x8xf32>
    %cst_27 = arith.constant dense<0.000000e+00> : vector<8x8xf32>
    %56 = tpu.matmul %55, %41, %cst_27 {dimension_numbers = #tpu.dot_dimension_numbers<[1], [0], [0], [1], [0, 0, 1, 1], [], []>} : vector<8x8xf32>, vector<8x8xf32>, vector<8x8xf32> -> vector<8x8xf32>
    %57 = vector.extract_strided_slice %37 {offsets = [0, 0], sizes = [8, 32], strides = [1, 1]} : vector<32x32xf32> to vector<8x32xf32>
    %cst_28 = arith.constant dense<0.000000e+00> : vector<8x32xf32>
    %58 = tpu.matmul %56, %57, %cst_28 {dimension_numbers = #tpu.dot_dimension_numbers<[1], [0], [0], [1], [0, 0, 1, 1], [], []>} : vector<8x8xf32>, vector<8x32xf32>, vector<8x32xf32> -> vector<8x32xf32>
    %59 = arith.addf %38, %58 : vector<8x32xf32>
    %60 = vector.extract_strided_slice %30 {offsets = [0, 8], sizes = [8, 8], strides = [1, 1]} : vector<8x96xf32> to vector<8x8xf32>
    %61 = vector.extract_strided_slice %30 {offsets = [0, 40], sizes = [8, 8], strides = [1, 1]} : vector<8x96xf32> to vector<8x8xf32>
    %62 = vector.extract_strided_slice %30 {offsets = [0, 72], sizes = [8, 8], strides = [1, 1]} : vector<8x96xf32> to vector<8x8xf32>
    %cst_29 = arith.constant dense<0.000000e+00> : vector<8x8xf32>
    %63 = tpu.matmul %60, %61, %cst_29 {dimension_numbers = #tpu.dot_dimension_numbers<[1], [1], [0], [0], [0, 0, 1, 0], [], []>} : vector<8x8xf32>, vector<8x8xf32>, vector<8x8xf32> -> vector<8x8xf32>
    %cst_30 = arith.constant 0.353553385 : f32
    %64 = vector.broadcast %cst_30 : f32 to vector<8x8xf32>
    %65 = arith.mulf %63, %64 : vector<8x8xf32>
    %66 = arith.addf %65, %36 : vector<8x8xf32>
    %cst_31 = arith.constant dense<0xFF800000> : vector<8xf32>
    %67 = vector.multi_reduction <maximumf>, %66, %cst_31 [1] : vector<8x8xf32> to vector<8xf32>
    %68 = vector.shape_cast %67 : vector<8xf32> to vector<8x1xf32>
    %69 = vector.broadcast %68 : vector<8x1xf32> to vector<8x8xf32>
    %70 = arith.subf %66, %69 : vector<8x8xf32>
    %71 = math.exp %70 : vector<8x8xf32>
    %cst_32 = arith.constant dense<0.000000e+00> : vector<8xf32>
    %72 = vector.multi_reduction <add>, %71, %cst_32 [1] : vector<8x8xf32> to vector<8xf32>
    %73 = vector.shape_cast %72 : vector<8xf32> to vector<8x1xf32>
    %74 = tpu.reciprocal %73 : vector<8x1xf32> -> vector<8x1xf32>
    %75 = vector.broadcast %74 : vector<8x1xf32> to vector<8x8xf32>
    %76 = arith.mulf %71, %75 : vector<8x8xf32>
    %cst_33 = arith.constant dense<0.000000e+00> : vector<8x8xf32>
    %77 = tpu.matmul %76, %62, %cst_33 {dimension_numbers = #tpu.dot_dimension_numbers<[1], [0], [0], [1], [0, 0, 1, 1], [], []>} : vector<8x8xf32>, vector<8x8xf32>, vector<8x8xf32> -> vector<8x8xf32>
    %78 = vector.extract_strided_slice %37 {offsets = [8, 0], sizes = [8, 32], strides = [1, 1]} : vector<32x32xf32> to vector<8x32xf32>
    %cst_34 = arith.constant dense<0.000000e+00> : vector<8x32xf32>
    %79 = tpu.matmul %77, %78, %cst_34 {dimension_numbers = #tpu.dot_dimension_numbers<[1], [0], [0], [1], [0, 0, 1, 1], [], []>} : vector<8x8xf32>, vector<8x32xf32>, vector<8x32xf32> -> vector<8x32xf32>
    %80 = arith.addf %59, %79 : vector<8x32xf32>
    %81 = vector.extract_strided_slice %30 {offsets = [0, 16], sizes = [8, 8], strides = [1, 1]} : vector<8x96xf32> to vector<8x8xf32>
    %82 = vector.extract_strided_slice %30 {offsets = [0, 48], sizes = [8, 8], strides = [1, 1]} : vector<8x96xf32> to vector<8x8xf32>
    %83 = vector.extract_strided_slice %30 {offsets = [0, 80], sizes = [8, 8], strides = [1, 1]} : vector<8x96xf32> to vector<8x8xf32>
    %cst_35 = arith.constant dense<0.000000e+00> : vector<8x8xf32>
    %84 = tpu.matmul %81, %82, %cst_35 {dimension_numbers = #tpu.dot_dimension_numbers<[1], [1], [0], [0], [0, 0, 1, 0], [], []>} : vector<8x8xf32>, vector<8x8xf32>, vector<8x8xf32> -> vector<8x8xf32>
    %cst_36 = arith.constant 0.353553385 : f32
    %85 = vector.broadcast %cst_36 : f32 to vector<8x8xf32>
    %86 = arith.mulf %84, %85 : vector<8x8xf32>
    %87 = arith.addf %86, %36 : vector<8x8xf32>
    %cst_37 = arith.constant dense<0xFF800000> : vector<8xf32>
    %88 = vector.multi_reduction <maximumf>, %87, %cst_37 [1] : vector<8x8xf32> to vector<8xf32>
    %89 = vector.shape_cast %88 : vector<8xf32> to vector<8x1xf32>
    %90 = vector.broadcast %89 : vector<8x1xf32> to vector<8x8xf32>
    %91 = arith.subf %87, %90 : vector<8x8xf32>
    %92 = math.exp %91 : vector<8x8xf32>
    %cst_38 = arith.constant dense<0.000000e+00> : vector<8xf32>
    %93 = vector.multi_reduction <add>, %92, %cst_38 [1] : vector<8x8xf32> to vector<8xf32>
    %94 = vector.shape_cast %93 : vector<8xf32> to vector<8x1xf32>
    %95 = tpu.reciprocal %94 : vector<8x1xf32> -> vector<8x1xf32>
    %96 = vector.broadcast %95 : vector<8x1xf32> to vector<8x8xf32>
    %97 = arith.mulf %92, %96 : vector<8x8xf32>
    %cst_39 = arith.constant dense<0.000000e+00> : vector<8x8xf32>
    %98 = tpu.matmul %97, %83, %cst_39 {dimension_numbers = #tpu.dot_dimension_numbers<[1], [0], [0], [1], [0, 0, 1, 1], [], []>} : vector<8x8xf32>, vector<8x8xf32>, vector<8x8xf32> -> vector<8x8xf32>
    %99 = vector.extract_strided_slice %37 {offsets = [16, 0], sizes = [8, 32], strides = [1, 1]} : vector<32x32xf32> to vector<8x32xf32>
    %cst_40 = arith.constant dense<0.000000e+00> : vector<8x32xf32>
    %100 = tpu.matmul %98, %99, %cst_40 {dimension_numbers = #tpu.dot_dimension_numbers<[1], [0], [0], [1], [0, 0, 1, 1], [], []>} : vector<8x8xf32>, vector<8x32xf32>, vector<8x32xf32> -> vector<8x32xf32>
    %101 = arith.addf %80, %100 : vector<8x32xf32>
    %102 = vector.extract_strided_slice %30 {offsets = [0, 24], sizes = [8, 8], strides = [1, 1]} : vector<8x96xf32> to vector<8x8xf32>
    %103 = vector.extract_strided_slice %30 {offsets = [0, 56], sizes = [8, 8], strides = [1, 1]} : vector<8x96xf32> to vector<8x8xf32>
    %104 = vector.extract_strided_slice %30 {offsets = [0, 88], sizes = [8, 8], strides = [1, 1]} : vector<8x96xf32> to vector<8x8xf32>
    %cst_41 = arith.constant dense<0.000000e+00> : vector<8x8xf32>
    %105 = tpu.matmul %102, %103, %cst_41 {dimension_numbers = #tpu.dot_dimension_numbers<[1], [1], [0], [0], [0, 0, 1, 0], [], []>} : vector<8x8xf32>, vector<8x8xf32>, vector<8x8xf32> -> vector<8x8xf32>
    %cst_42 = arith.constant 0.353553385 : f32
    %106 = vector.broadcast %cst_42 : f32 to vector<8x8xf32>
    %107 = arith.mulf %105, %106 : vector<8x8xf32>
    %108 = arith.addf %107, %36 : vector<8x8xf32>
    %cst_43 = arith.constant dense<0xFF800000> : vector<8xf32>
    %109 = vector.multi_reduction <maximumf>, %108, %cst_43 [1] : vector<8x8xf32> to vector<8xf32>
    %110 = vector.shape_cast %109 : vector<8xf32> to vector<8x1xf32>
    %111 = vector.broadcast %110 : vector<8x1xf32> to vector<8x8xf32>
    %112 = arith.subf %108, %111 : vector<8x8xf32>
    %113 = math.exp %112 : vector<8x8xf32>
    %cst_44 = arith.constant dense<0.000000e+00> : vector<8xf32>
    %114 = vector.multi_reduction <add>, %113, %cst_44 [1] : vector<8x8xf32> to vector<8xf32>
    %115 = vector.shape_cast %114 : vector<8xf32> to vector<8x1xf32>
    %116 = tpu.reciprocal %115 : vector<8x1xf32> -> vector<8x1xf32>
    %117 = vector.broadcast %116 : vector<8x1xf32> to vector<8x8xf32>
    %118 = arith.mulf %113, %117 : vector<8x8xf32>
    %cst_45 = arith.constant dense<0.000000e+00> : vector<8x8xf32>
    %119 = tpu.matmul %118, %104, %cst_45 {dimension_numbers = #tpu.dot_dimension_numbers<[1], [0], [0], [1], [0, 0, 1, 1], [], []>} : vector<8x8xf32>, vector<8x8xf32>, vector<8x8xf32> -> vector<8x8xf32>
    %120 = vector.extract_strided_slice %37 {offsets = [24, 0], sizes = [8, 32], strides = [1, 1]} : vector<32x32xf32> to vector<8x32xf32>
    %cst_46 = arith.constant dense<0.000000e+00> : vector<8x32xf32>
    %121 = tpu.matmul %119, %120, %cst_46 {dimension_numbers = #tpu.dot_dimension_numbers<[1], [0], [0], [1], [0, 0, 1, 1], [], []>} : vector<8x8xf32>, vector<8x32xf32>, vector<8x32xf32> -> vector<8x32xf32>
    %122 = arith.addf %101, %121 : vector<8x32xf32>
    %c0_47 = arith.constant 0 : index
    %c0_48 = arith.constant 0 : index
    %123 = vector.load %arg8[%c0_47, %c0_48] : memref<1x32xf32, #tpu.memory_space<vmem>>, vector<1x32xf32>
    %124 = vector.broadcast %123 : vector<1x32xf32> to vector<8x32xf32>
    %125 = arith.addf %122, %124 : vector<8x32xf32>
    %126 = arith.addf %125, %1 : vector<8x32xf32>
    %c0_49 = arith.constant 0 : index
    %c0_50 = arith.constant 0 : index
    %c0_51 = arith.constant 0 : index
    %127 = vector.load %arg9[%c0_49, %c0_50, %c0_51] : memref<1x8x32xf32, #tpu.memory_space<vmem>>, vector<1x8x32xf32>
    %128 = vector.shape_cast %127 : vector<1x8x32xf32> to vector<8x32xf32>
    %129 = vector.shape_cast %126 : vector<8x32xf32> to vector<1x8x32xf32>
    tpu.vector_store %arg9[%c0_49, %c0_50, %c0_51], %129 {strides = array<i32>} : memref<1x8x32xf32, #tpu.memory_space<vmem>>, vector<1x8x32xf32>,
    return
  }
  func.func @transform_0(%arg0: i32) -> (i32, i32, i32) {
    %c0_i32 = arith.constant 0 : i32
    %c0_i32_0 = arith.constant 0 : i32
    %c0_i32_1 = arith.constant 0 : i32
    return %arg0, %c0_i32, %c0_i32_0 : i32, i32, i32
  }
  func.func @transform_1(%arg0: i32) -> (i32, i32, i32) {
    %c0_i32 = arith.constant 0 : i32
    %c0_i32_0 = arith.constant 0 : i32
    %c0_i32_1 = arith.constant 0 : i32
    return %arg0, %c0_i32, %c0_i32_0 : i32, i32, i32
  }
  func.func @transform_2(%arg0: i32) -> (i32, i32) {
    %c0_i32 = arith.constant 0 : i32
    %c0_i32_0 = arith.constant 0 : i32
    %c0_i32_1 = arith.constant 0 : i32
    return %c0_i32, %c0_i32_0 : i32, i32
  }
  func.func @transform_3(%arg0: i32) -> (i32, i32) {
    %c0_i32 = arith.constant 0 : i32
    %c0_i32_0 = arith.constant 0 : i32
    %c0_i32_1 = arith.constant 0 : i32
    return %c0_i32, %c0_i32_0 : i32, i32
  }
  func.func @transform_4(%arg0: i32) -> (i32, i32) {
    %c0_i32 = arith.constant 0 : i32
    %c0_i32_0 = arith.constant 0 : i32
    %c0_i32_1 = arith.constant 0 : i32
    return %c0_i32, %c0_i32_0 : i32, i32
  }
  func.func @transform_5(%arg0: i32) -> (i32, i32) {
    %c0_i32 = arith.constant 0 : i32
    %c0_i32_0 = arith.constant 0 : i32
    %c0_i32_1 = arith.constant 0 : i32
    return %c0_i32, %c0_i32_0 : i32, i32
  }
  func.func @transform_6(%arg0: i32) -> (i32, i32) {
    %c0_i32 = arith.constant 0 : i32
    %c0_i32_0 = arith.constant 0 : i32
    %c0_i32_1 = arith.constant 0 : i32
    return %c0_i32, %c0_i32_0 : i32, i32
  }
  func.func @transform_7(%arg0: i32) -> (i32, i32) {
    %c0_i32 = arith.constant 0 : i32
    %c0_i32_0 = arith.constant 0 : i32
    %c0_i32_1 = arith.constant 0 : i32
    return %c0_i32, %c0_i32_0 : i32, i32
  }
  func.func @transform_8(%arg0: i32) -> (i32, i32, i32) {
    %c0_i32 = arith.constant 0 : i32
    %c0_i32_0 = arith.constant 0 : i32
    %c0_i32_1 = arith.constant 0 : i32
    return %arg0, %c0_i32, %c0_i32_0 : i32, i32, i32
  }
}

module attributes {stable_mosaic.version = 11 : i64} {
  func.func @_attn_block_kernel(%arg0: i32, %arg1: memref<1x8x32xf32, #tpu.memory_space<vmem>>, %arg2: memref<1x8x8xf32, #tpu.memory_space<vmem>>, %arg3: memref<1x32xf32, #tpu.memory_space<vmem>>, %arg4: memref<1x32xf32, #tpu.memory_space<vmem>>, %arg5: memref<32x96xf32, #tpu.memory_space<vmem>>, %arg6: memref<1x96xf32, #tpu.memory_space<vmem>>, %arg7: memref<32x32xf32, #tpu.memory_space<vmem>>, %arg8: memref<1x32xf32, #tpu.memory_space<vmem>>, %arg9: memref<1x8x32xf32, #tpu.memory_space<vmem>>) attributes {dimension_semantics = [#tpu.dimension_semantics<parallel>], iteration_bounds = array<i64: 2>, scalar_prefetch = 0 : i64, scratch_operands = 0 : i64, tpu.core_type = #tpu.core_type<tc>, window_params = [{transform_indices = @transform_0, window_bounds = array<i64: 1, 8, 32>}, {transform_indices = @transform_1, window_bounds = array<i64: 1, 8, 8>}, {pipeline_mode = #tpu.pipeline_mode<synchronous>, transform_indices = @transform_2, window_bounds = array<i64: 1, 32>}, {pipeline_mode = #tpu.pipeline_mode<synchronous>, transform_indices = @transform_3, window_bounds = array<i64: 1, 32>}, {pipeline_mode = #tpu.pipeline_mode<synchronous>, transform_indices = @transform_4, window_bounds = array<i64: 32, 96>}, {pipeline_mode = #tpu.pipeline_mode<synchronous>, transform_indices = @transform_5, window_bounds = array<i64: 1, 96>}, {pipeline_mode = #tpu.pipeline_mode<synchronous>, transform_indices = @transform_6, window_bounds = array<i64: 32, 32>}, {pipeline_mode = #tpu.pipeline_mode<synchronous>, transform_indices = @transform_7, window_bounds = array<i64: 1, 32>}, {transform_indices = @transform_8, window_bounds = array<i64: 1, 8, 32>}]} {
    %c0 = arith.constant 0 : index
    %c0_0 = arith.constant 0 : index
    %c0_1 = arith.constant 0 : index
    %0 = vector.load %arg1[%c0, %c0_0, %c0_1] : memref<1x8x32xf32, #tpu.memory_space<vmem>>, vector<1x8x32xf32>
    %1 = vector.shape_cast %0 : vector<1x8x32xf32> to vector<8x32xf32>
    %c0_2 = arith.constant 0 : index
    %c0_3 = arith.constant 0 : index
    %2 = vector.load %arg3[%c0_2, %c0_3] : memref<1x32xf32, #tpu.memory_space<vmem>>, vector<1x32xf32>
    %c0_4 = arith.constant 0 : index
    %c0_5 = arith.constant 0 : index
    %3 = vector.load %arg4[%c0_4, %c0_5] : memref<1x32xf32, #tpu.memory_space<vmem>>, vector<1x32xf32>
    %cst = arith.constant dense<0.000000e+00> : vector<8xf32>
    %4 = vector.multi_reduction <add>, %1, %cst [1] : vector<8x32xf32> to vector<8xf32>
    %5 = vector.shape_cast %4 : vector<8xf32> to vector<8x1xf32>
    %cst_6 = arith.constant 3.200000e+01 : f32
    %6 = vector.broadcast %cst_6 : f32 to vector<8x1xf32>
    %7 = arith.divf %5, %6 : vector<8x1xf32>
    %8 = vector.broadcast %7 : vector<8x1xf32> to vector<8x32xf32>
    %9 = arith.subf %1, %8 : vector<8x32xf32>
    %10 = arith.mulf %9, %9 : vector<8x32xf32>
    %cst_7 = arith.constant dense<0.000000e+00> : vector<8xf32>
    %11 = vector.multi_reduction <add>, %10, %cst_7 [1] : vector<8x32xf32> to vector<8xf32>
    %12 = vector.shape_cast %11 : vector<8xf32> to vector<8x1xf32>
    %cst_8 = arith.constant 3.100000e+01 : f32
    %13 = vector.broadcast %cst_8 : f32 to vector<8x1xf32>
    %14 = arith.divf %12, %13 : vector<8x1xf32>
    %15 = vector.broadcast %7 : vector<8x1xf32> to vector<8x32xf32>
    %16 = arith.subf %1, %15 : vector<8x32xf32>
    %17 = vector.broadcast %2 : vector<1x32xf32> to vector<8x32xf32>
    %18 = arith.mulf %17, %16 : vector<8x32xf32>
    %19 = math.sqrt %14 : vector<8x1xf32>
    %cst_9 = arith.constant 9.99999997E-7 : f32
    %20 = vector.broadcast %cst_9 : f32 to vector<8x1xf32>
    %21 = arith.addf %19, %20 : vector<8x1xf32>
    %22 = vector.broadcast %21 : vector<8x1xf32> to vector<8x32xf32>
    %23 = arith.divf %18, %22 : vector<8x32xf32>
    %24 = vector.broadcast %3 : vector<1x32xf32> to vector<8x32xf32>
    %25 = arith.addf %23, %24 : vector<8x32xf32>
    %c0_10 = arith.constant 0 : index
    %c0_11 = arith.constant 0 : index
    %26 = vector.load %arg5[%c0_10, %c0_11] : memref<32x96xf32, #tpu.memory_space<vmem>>, vector<32x96xf32>
    %cst_12 = arith.constant dense<0.000000e+00> : vector<8x96xf32>
    %27 = tpu.matmul %25, %26, %cst_12 {dimension_numbers = #tpu.dot_dimension_numbers<[1], [0], [0], [1], [0, 0, 1, 1], [], []>} : vector<8x32xf32>, vector<32x96xf32>, vector<8x96xf32> -> vector<8x96xf32>
    %c0_13 = arith.constant 0 : index
    %c0_14 = arith.constant 0 : index
    %28 = vector.load %arg6[%c0_13, %c0_14] : memref<1x96xf32, #tpu.memory_space<vmem>>, vector<1x96xf32>
    %29 = vector.broadcast %28 : vector<1x96xf32> to vector<8x96xf32>
    %30 = arith.addf %27, %29 : vector<8x96xf32>
    %c0_15 = arith.constant 0 : index
    %c0_16 = arith.constant 0 : index
    %c0_17 = arith.constant 0 : index
    %31 = vector.load %arg2[%c0_15, %c0_16, %c0_17] : memref<1x8x8xf32, #tpu.memory_space<vmem>>, vector<1x8x8xf32>
    %32 = vector.shape_cast %31 : vector<1x8x8xf32> to vector<8x8xf32>
    %cst_18 = arith.constant 1.000000e+00 : f32
    %33 = vector.broadcast %cst_18 : f32 to vector<8x8xf32>
    %34 = arith.subf %32, %33 : vector<8x8xf32>
    %cst_19 = arith.constant 1.000000e+09 : f32
    %35 = vector.broadcast %cst_19 : f32 to vector<8x8xf32>
    %36 = arith.mulf %34, %35 : vector<8x8xf32>
    %c0_20 = arith.constant 0 : index
    %c0_21 = arith.constant 0 : index
    %37 = vector.load %arg7[%c0_20, %c0_21] : memref<32x32xf32, #tpu.memory_space<vmem>>, vector<32x32xf32>
    %cst_22 = arith.constant 0.000000e+00 : f32
    %38 = vector.broadcast %cst_22 : f32 to vector<8x32xf32>
    %39 = vector.extract_strided_slice %30 {offsets = [0, 0], sizes = [8, 8], strides = [1, 1]} : vector<8x96xf32> to vector<8x8xf32>
    %40 = vector.extract_strided_slice %30 {offsets = [0, 32], sizes = [8, 8], strides = [1, 1]} : vector<8x96xf32> to vector<8x8xf32>
    %41 = vector.extract_strided_slice %30 {offsets = [0, 64], sizes = [8, 8], strides = [1, 1]} : vector<8x96xf32> to vector<8x8xf32>
    %cst_23 = arith.constant dense<0.000000e+00> : vector<8x8xf32>
    %42 = tpu.matmul %39, %40, %cst_23 {dimension_numbers = #tpu.dot_dimension_numbers<[1], [1], [0], [0], [0, 0, 1, 0], [], []>} : vector<8x8xf32>, vector<8x8xf32>, vector<8x8xf32> -> vector<8x8xf32>
    %cst_24 = arith.constant 0.353553385 : f32
    %43 = vector.broadcast %cst_24 : f32 to vector<8x8xf32>
    %44 = arith.mulf %42, %43 : vector<8x8xf32>
    %45 = arith.addf %44, %36 : vector<8x8xf32>
    %cst_25 = arith.constant dense<0xFF800000> : vector<8xf32>
    %46 = vector.multi_reduction <maximumf>, %45, %cst_25 [1] : vector<8x8xf32> to vector<8xf32>
    %47 = vector.shape_cast %46 : vector<8xf32> to vector<8x1xf32>
    %48 = vector.broadcast %47 : vector<8x1xf32> to vector<8x8xf32>
    %49 = arith.subf %45, %48 : vector<8x8xf32>
    %50 = math.exp %49 : vector<8x8xf32>
    %cst_26 = arith.constant dense<0.000000e+00> : vector<8xf32>
    %51 = vector.multi_reduction <add>, %50, %cst_26 [1] : vector<8x8xf32> to vector<8xf32>
    %52 = vector.shape_cast %51 : vector<8xf32> to vector<8x1xf32>
    %53 = tpu.reciprocal %52 : vector<8x1xf32> -> vector<8x1xf32>
    %54 = vector.broadcast %53 : vector<8x1xf32> to vector<8x8xf32>
    %55 = arith.mulf %50, %54 : vector<8x8xf32>
    %cst_27 = arith.constant dense<0.000000e+00> : vector<8x8xf32>
    %56 = tpu.matmul %55, %41, %cst_27 {dimension_numbers = #tpu.dot_dimension_numbers<[1], [0], [0], [1], [0, 0, 1, 1], [], []>} : vector<8x8xf32>, vector<8x8xf32>, vector<8x8xf32> -> vector<8x8xf32>
    %57 = vector.extract_strided_slice %37 {offsets = [0, 0], sizes = [8, 32], strides = [1, 1]} : vector<32x32xf32> to vector<8x32xf32>
    %cst_28 = arith.constant dense<0.000000e+00> : vector<8x32xf32>
    %58 = tpu.matmul %56, %57, %cst_28 {dimension_numbers = #tpu.dot_dimension_numbers<[1], [0], [0], [1], [0, 0, 1, 1], [], []>} : vector<8x8xf32>, vector<8x32xf32>, vector<8x32xf32> -> vector<8x32xf32>
    %59 = arith.addf %38, %58 : vector<8x32xf32>
    %60 = vector.extract_strided_slice %30 {offsets = [0, 8], sizes = [8, 8], strides = [1, 1]} : vector<8x96xf32> to vector<8x8xf32>
    %61 = vector.extract_strided_slice %30 {offsets = [0, 40], sizes = [8, 8], strides = [1, 1]} : vector<8x96xf32> to vector<8x8xf32>
    %62 = vector.extract_strided_slice %30 {offsets = [0, 72], sizes = [8, 8], strides = [1, 1]} : vector<8x96xf32> to vector<8x8xf32>
    %cst_29 = arith.constant dense<0.000000e+00> : vector<8x8xf32>
    %63 = tpu.matmul %60, %61, %cst_29 {dimension_numbers = #tpu.dot_dimension_numbers<[1], [1], [0], [0], [0, 0, 1, 0], [], []>} : vector<8x8xf32>, vector<8x8xf32>, vector<8x8xf32> -> vector<8x8xf32>
    %cst_30 = arith.constant 0.353553385 : f32
    %64 = vector.broadcast %cst_30 : f32 to vector<8x8xf32>
    %65 = arith.mulf %63, %64 : vector<8x8xf32>
    %66 = arith.addf %65, %36 : vector<8x8xf32>
    %cst_31 = arith.constant dense<0xFF800000> : vector<8xf32>
    %67 = vector.multi_reduction <maximumf>, %66, %cst_31 [1] : vector<8x8xf32> to vector<8xf32>
    %68 = vector.shape_cast %67 : vector<8xf32> to vector<8x1xf32>
    %69 = vector.broadcast %68 : vector<8x1xf32> to vector<8x8xf32>
    %70 = arith.subf %66, %69 : vector<8x8xf32>
    %71 = math.exp %70 : vector<8x8xf32>
    %cst_32 = arith.constant dense<0.000000e+00> : vector<8xf32>
    %72 = vector.multi_reduction <add>, %71, %cst_32 [1] : vector<8x8xf32> to vector<8xf32>
    %73 = vector.shape_cast %72 : vector<8xf32> to vector<8x1xf32>
    %74 = tpu.reciprocal %73 : vector<8x1xf32> -> vector<8x1xf32>
    %75 = vector.broadcast %74 : vector<8x1xf32> to vector<8x8xf32>
    %76 = arith.mulf %71, %75 : vector<8x8xf32>
    %cst_33 = arith.constant dense<0.000000e+00> : vector<8x8xf32>
    %77 = tpu.matmul %76, %62, %cst_33 {dimension_numbers = #tpu.dot_dimension_numbers<[1], [0], [0], [1], [0, 0, 1, 1], [], []>} : vector<8x8xf32>, vector<8x8xf32>, vector<8x8xf32> -> vector<8x8xf32>
    %78 = vector.extract_strided_slice %37 {offsets = [8, 0], sizes = [8, 32], strides = [1, 1]} : vector<32x32xf32> to vector<8x32xf32>
    %cst_34 = arith.constant dense<0.000000e+00> : vector<8x32xf32>
    %79 = tpu.matmul %77, %78, %cst_34 {dimension_numbers = #tpu.dot_dimension_numbers<[1], [0], [0], [1], [0, 0, 1, 1], [], []>} : vector<8x8xf32>, vector<8x32xf32>, vector<8x32xf32> -> vector<8x32xf32>
    %80 = arith.addf %59, %79 : vector<8x32xf32>
    %81 = vector.extract_strided_slice %30 {offsets = [0, 16], sizes = [8, 8], strides = [1, 1]} : vector<8x96xf32> to vector<8x8xf32>
    %82 = vector.extract_strided_slice %30 {offsets = [0, 48], sizes = [8, 8], strides = [1, 1]} : vector<8x96xf32> to vector<8x8xf32>
    %83 = vector.extract_strided_slice %30 {offsets = [0, 80], sizes = [8, 8], strides = [1, 1]} : vector<8x96xf32> to vector<8x8xf32>
    %cst_35 = arith.constant dense<0.000000e+00> : vector<8x8xf32>
    %84 = tpu.matmul %81, %82, %cst_35 {dimension_numbers = #tpu.dot_dimension_numbers<[1], [1], [0], [0], [0, 0, 1, 0], [], []>} : vector<8x8xf32>, vector<8x8xf32>, vector<8x8xf32> -> vector<8x8xf32>
    %cst_36 = arith.constant 0.353553385 : f32
    %85 = vector.broadcast %cst_36 : f32 to vector<8x8xf32>
    %86 = arith.mulf %84, %85 : vector<8x8xf32>
    %87 = arith.addf %86, %36 : vector<8x8xf32>
    %cst_37 = arith.constant dense<0xFF800000> : vector<8xf32>
    %88 = vector.multi_reduction <maximumf>, %87, %cst_37 [1] : vector<8x8xf32> to vector<8xf32>
    %89 = vector.shape_cast %88 : vector<8xf32> to vector<8x1xf32>
    %90 = vector.broadcast %89 : vector<8x1xf32> to vector<8x8xf32>
    %91 = arith.subf %87, %90 : vector<8x8xf32>
    %92 = math.exp %91 : vector<8x8xf32>
    %cst_38 = arith.constant dense<0.000000e+00> : vector<8xf32>
    %93 = vector.multi_reduction <add>, %92, %cst_38 [1] : vector<8x8xf32> to vector<8xf32>
    %94 = vector.shape_cast %93 : vector<8xf32> to vector<8x1xf32>
    %95 = tpu.reciprocal %94 : vector<8x1xf32> -> vector<8x1xf32>
    %96 = vector.broadcast %95 : vector<8x1xf32> to vector<8x8xf32>
    %97 = arith.mulf %92, %96 : vector<8x8xf32>
    %cst_39 = arith.constant dense<0.000000e+00> : vector<8x8xf32>
    %98 = tpu.matmul %97, %83, %cst_39 {dimension_numbers = #tpu.dot_dimension_numbers<[1], [0], [0], [1], [0, 0, 1, 1], [], []>} : vector<8x8xf32>, vector<8x8xf32>, vector<8x8xf32> -> vector<8x8xf32>
    %99 = vector.extract_strided_slice %37 {offsets = [16, 0], sizes = [8, 32], strides = [1, 1]} : vector<32x32xf32> to vector<8x32xf32>
    %cst_40 = arith.constant dense<0.000000e+00> : vector<8x32xf32>
    %100 = tpu.matmul %98, %99, %cst_40 {dimension_numbers = #tpu.dot_dimension_numbers<[1], [0], [0], [1], [0, 0, 1, 1], [], []>} : vector<8x8xf32>, vector<8x32xf32>, vector<8x32xf32> -> vector<8x32xf32>
    %101 = arith.addf %80, %100 : vector<8x32xf32>
    %102 = vector.extract_strided_slice %30 {offsets = [0, 24], sizes = [8, 8], strides = [1, 1]} : vector<8x96xf32> to vector<8x8xf32>
    %103 = vector.extract_strided_slice %30 {offsets = [0, 56], sizes = [8, 8], strides = [1, 1]} : vector<8x96xf32> to vector<8x8xf32>
    %104 = vector.extract_strided_slice %30 {offsets = [0, 88], sizes = [8, 8], strides = [1, 1]} : vector<8x96xf32> to vector<8x8xf32>
    %cst_41 = arith.constant dense<0.000000e+00> : vector<8x8xf32>
    %105 = tpu.matmul %102, %103, %cst_41 {dimension_numbers = #tpu.dot_dimension_numbers<[1], [1], [0], [0], [0, 0, 1, 0], [], []>} : vector<8x8xf32>, vector<8x8xf32>, vector<8x8xf32> -> vector<8x8xf32>
    %cst_42 = arith.constant 0.353553385 : f32
    %106 = vector.broadcast %cst_42 : f32 to vector<8x8xf32>
    %107 = arith.mulf %105, %106 : vector<8x8xf32>
    %108 = arith.addf %107, %36 : vector<8x8xf32>
    %cst_43 = arith.constant dense<0xFF800000> : vector<8xf32>
    %109 = vector.multi_reduction <maximumf>, %108, %cst_43 [1] : vector<8x8xf32> to vector<8xf32>
    %110 = vector.shape_cast %109 : vector<8xf32> to vector<8x1xf32>
    %111 = vector.broadcast %110 : vector<8x1xf32> to vector<8x8xf32>
    %112 = arith.subf %108, %111 : vector<8x8xf32>
    %113 = math.exp %112 : vector<8x8xf32>
    %cst_44 = arith.constant dense<0.000000e+00> : vector<8xf32>
    %114 = vector.multi_reduction <add>, %113, %cst_44 [1] : vector<8x8xf32> to vector<8xf32>
    %115 = vector.shape_cast %114 : vector<8xf32> to vector<8x1xf32>
    %116 = tpu.reciprocal %115 : vector<8x1xf32> -> vector<8x1xf32>
    %117 = vector.broadcast %116 : vector<8x1xf32> to vector<8x8xf32>
    %118 = arith.mulf %113, %117 : vector<8x8xf32>
    %cst_45 = arith.constant dense<0.000000e+00> : vector<8x8xf32>
    %119 = tpu.matmul %118, %104, %cst_45 {dimension_numbers = #tpu.dot_dimension_numbers<[1], [0], [0], [1], [0, 0, 1, 1], [], []>} : vector<8x8xf32>, vector<8x8xf32>, vector<8x8xf32> -> vector<8x8xf32>
    %120 = vector.extract_strided_slice %37 {offsets = [24, 0], sizes = [8, 32], strides = [1, 1]} : vector<32x32xf32> to vector<8x32xf32>
    %cst_46 = arith.constant dense<0.000000e+00> : vector<8x32xf32>
    %121 = tpu.matmul %119, %120, %cst_46 {dimension_numbers = #tpu.dot_dimension_numbers<[1], [0], [0], [1], [0, 0, 1, 1], [], []>} : vector<8x8xf32>, vector<8x32xf32>, vector<8x32xf32> -> vector<8x32xf32>
    %122 = arith.addf %101, %121 : vector<8x32xf32>
    %c0_47 = arith.constant 0 : index
    %c0_48 = arith.constant 0 : index
    %123 = vector.load %arg8[%c0_47, %c0_48] : memref<1x32xf32, #tpu.memory_space<vmem>>, vector<1x32xf32>
    %124 = vector.broadcast %123 : vector<1x32xf32> to vector<8x32xf32>
    %125 = arith.addf %122, %124 : vector<8x32xf32>
    %126 = arith.addf %125, %1 : vector<8x32xf32>
    %c0_49 = arith.constant 0 : index
    %c0_50 = arith.constant 0 : index
    %c0_51 = arith.constant 0 : index
    %127 = vector.load %arg9[%c0_49, %c0_50, %c0_51] : memref<1x8x32xf32, #tpu.memory_space<vmem>>, vector<1x8x32xf32>
    %128 = vector.shape_cast %127 : vector<1x8x32xf32> to vector<8x32xf32>
    %129 = vector.shape_cast %126 : vector<8x32xf32> to vector<1x8x32xf32>
    tpu.vector_store %arg9[%c0_49, %c0_50, %c0_51], %129 {strides = array<i32>} : memref<1x8x32xf32, #tpu.memory_space<vmem>>, vector<1x8x32xf32>,
    return
  }
  func.func @transform_0(%arg0: i32) -> (i32, i32, i32) {
    %c0_i32 = arith.constant 0 : i32
    %c0_i32_0 = arith.constant 0 : i32
    %c0_i32_1 = arith.constant 0 : i32
    return %arg0, %c0_i32, %c0_i32_0 : i32, i32, i32
  }
  func.func @transform_1(%arg0: i32) -> (i32, i32, i32) {
    %c0_i32 = arith.constant 0 : i32
    %c0_i32_0 = arith.constant 0 : i32
    %c0_i32_1 = arith.constant 0 : i32
    return %arg0, %c0_i32, %c0_i32_0 : i32, i32, i32
  }
  func.func @transform_2(%arg0: i32) -> (i32, i32) {
    %c0_i32 = arith.constant 0 : i32
    %c0_i32_0 = arith.constant 0 : i32
    %c0_i32_1 = arith.constant 0 : i32
    return %c0_i32, %c0_i32_0 : i32, i32
  }
  func.func @transform_3(%arg0: i32) -> (i32, i32) {
    %c0_i32 = arith.constant 0 : i32
    %c0_i32_0 = arith.constant 0 : i32
    %c0_i32_1 = arith.constant 0 : i32
    return %c0_i32, %c0_i32_0 : i32, i32
  }
  func.func @transform_4(%arg0: i32) -> (i32, i32) {
    %c0_i32 = arith.constant 0 : i32
    %c0_i32_0 = arith.constant 0 : i32
    %c0_i32_1 = arith.constant 0 : i32
    return %c0_i32, %c0_i32_0 : i32, i32
  }
  func.func @transform_5(%arg0: i32) -> (i32, i32) {
    %c0_i32 = arith.constant 0 : i32
    %c0_i32_0 = arith.constant 0 : i32
    %c0_i32_1 = arith.constant 0 : i32
    return %c0_i32, %c0_i32_0 : i32, i32
  }
  func.func @transform_6(%arg0: i32) -> (i32, i32) {
    %c0_i32 = arith.constant 0 : i32
    %c0_i32_0 = arith.constant 0 : i32
    %c0_i32_1 = arith.constant 0 : i32
    return %c0_i32, %c0_i32_0 : i32, i32
  }
  func.func @transform_7(%arg0: i32) -> (i32, i32) {
    %c0_i32 = arith.constant 0 : i32
    %c0_i32_0 = arith.constant 0 : i32
    %c0_i32_1 = arith.constant 0 : i32
    return %c0_i32, %c0_i32_0 : i32, i32
  }
  func.func @transform_8(%arg0: i32) -> (i32, i32, i32) {
    %c0_i32 = arith.constant 0 : i32
    %c0_i32_0 = arith.constant 0 : i32
    %c0_i32_1 = arith.constant 0 : i32
    return %arg0, %c0_i32, %c0_i32_0 : i32, i32, i32
  }
}

</mosaic_0001>

<bundles_post_ra>
// kernel: tpu_custom_call.1
= control target key start
LH: loop header
LB: loop body
LE: loop exit
PB: predicated region body
PF: predicated region fallthrough
CT: control target
= control target key end

     0   :  { %s2445_s0 = inlined_call_operand.hbm [shape: f32[2,8,32], index: 0, kind: input, shape index: {}]   ;;  %s2446_s1 = inlined_call_operand.hbm [shape: f32[2,8,8], index: 1, kind: input, shape index: {}]   ;;  %s2447_s2 = inlined_call_operand.vmem [shape: f32[1,32], index: 2, kind: input, shape index: {}]   ;;  %s2448_s3 = inlined_call_operand.vmem [shape: f32[1,32], index: 3, kind: input, shape index: {}]   ;;  %s2449_s4 = inlined_call_operand.hbm [shape: f32[32,96], index: 4, kind: input, shape index: {}]   ;;  %s2450_s5 = inlined_call_operand.vmem [shape: f32[1,96], index: 5, kind: input, shape index: {}]   ;;  %s2451_s6 = inlined_call_operand.hbm [shape: f32[32,32], index: 6, kind: input, shape index: {}]   ;;  %s2452_s7 = inlined_call_operand.vmem [shape: f32[1,32], index: 7, kind: input, shape index: {}]   ;;  %s2453_s8 = inlined_call_operand.hbm [shape: f32[2,8,32], index: 8, kind: output, shape index: {}]  }
   0x1   :  { %2461 = sst [smem:[#allocation19_spill]] %s2449_s4 }
   0x2   :  { %2462 = sst [smem:[#allocation20_spill]] %s2451_s6 }
   0x3   :  { %13 = vsyncpa [#allocation3], 0 }
   0x4   :  { %15 = vsyncpa [#allocation3 + $0x1], 0 }
   0x5   :  { %16 = vsyncpa [#allocation6], 0 }
   0x6   :  { %18 = vsyncpa [#allocation6 + $0x1], 0 }
   0x7   :  { %19 = vsyncpa [#allocation9], 0 }
   0x8   :  { %20 = vsyncpa [#allocation4], 0 }
   0x9   :  { %22 = vsyncpa [#allocation4 + $0x1], 0  ;;  %s2115_s27 = smov 0   ;;  %s2117_s28 = smov 0  }
   0xa   :  { %s2119_s29 = smov 0   ;;  %s2121_s30 = smov 0  }
   0xb LB: > { %2463 = sst [smem:[#allocation16_spill]] %s2044_s29  ;;  %s2136_s9 = sadd.s32 4294967295, %s2048_s30   ;;  %s2048_s30 = sphi %s2121_s30, %s2484_s30   ;;  %s2044_s29 = sphi %s2119_s29, %s2486_s29   ;;  %s2040_s28 = sphi %s2117_s28, %s2488_s28   ;;  %s2036_s27 = sphi %s2115_s27, %s2487_s27  }
   0xc   : > { %s1616_s10 = sadd.s32 4294967294, %s2048_s30   ;;  %p48_p0 = scmp.ne.s32.totalorder %s2040_s28, %s2036_s27 }
   0xd   : > { %p2454_p1 = scmp.eq.s32.totalorder %s2136_s9, 0  ;;  %p230_p3 = scmp.eq.s32.totalorder %s1616_s10, 1 }
   0xe   : > { %p1617_p5 = scmp.ge.s32.totalorder %s2048_s30, 1  ;;  %p237_p7 = scmp.lt.s32.totalorder %s2048_s30, 3 }
   0xf   : > { %p2145_p4 = por %p2454_p1, %p48_p0  ;;  %p2150_p6 = por %p230_p3, %p48_p0 }
  0x10   : > { %p2155_p8 = pnand %p1617_p5, %p237_p7  ;;  %s2050_s14 = smov [#allocation7]  }
  0x11   : > { %s2464_s11 = scalar_select %p2145_p4, 1, 0 }
  0x12   : > { %s2465_s12 = scalar_select %p2150_p6, 1, 0 }
  0x13   : > { %s2466_s13 = scalar_select %p2155_p8, 1, 0 }
  0x14   : > { %s255_s15 = sshll.u32 %s2050_s14, 4  ;;  %p1771_p9 = pneg %p2155_p8  ;;  %s256_s15 = int_to_ptr.vmem [resolvable:$true] %s255_s15 }
  0x15   : > { %s2051_s17 = smov [#allocation8]   ;;  %s1875_s19 = scalar_lea.vmem %s256_s15, 512 }
  0x16   : > { %p2164_p11 = pnand %p1771_p9, %p2454_p1  ;;  %s271_s18 = sshll.u32 %s2051_s17, 4  ;;  %s272_s18 = int_to_ptr.vmem [resolvable:$true] %s271_s18 }
  0x17   : > { %p1876_p13 = scmp.ne.s32.totalorder %s256_s15, %s1875_s19  ;;  %p1883_p5 = scmp.lt.s32.totalorder %s256_s15, %s256_s15 }
  0x18   : > { %p1866_p12 = pneg %p2164_p11  ;;  %p1884_p7 = scmp.lt.s32.totalorder %s1875_s19, %s1875_s19 }
  0x1a   : > { %p1878_p0 = pnand %p1876_p13, %p1866_p12  ;;  %p1885_p10 = por %p1884_p7, %p1883_p5 }
  0x1c   : > { %p1879_p3 = pneg %p1878_p0 }
  0x1e   : > { %p1886_p9 = pnand %p1885_p10, %p1879_p3 }
  0x20   : > { %1889 = shalt.err (!%p1886_p9)
}
  0x21   : > { %s2052_s20 = smov 128   ;;  %s2053_s21 = smov 8  }
  0x22   : > { %s2468_s4 = sld [smem:[#allocation19_spill]]  ;;  %s1901_s24 = scalar_lea.vmem %s272_s18, 512 }
  0x23   : > { %p1902_p1 = scmp.ne.s32.totalorder %s272_s18, %s1901_s24  ;;  %p1909_p2 = scmp.lt.s32.totalorder %s272_s18, %s272_s18 }
  0x24   : > { %p1910_p6 = scmp.lt.s32.totalorder %s1901_s24, %s1901_s24 }
  0x25   : > { %p1904_p13 = pnand %p1902_p1, %p1866_p12 }
  0x26   : > { %p1911_p5 = por %p1910_p6, %p1909_p2 }
  0x27   : > { %p1905_p0 = pneg %p1904_p13 }
  0x28   : > { %1774 = dma.hbm_to_vmem [thread:$0]  (!%p2164_p11), %s2468_s4, 512, %s256_s15, [#allocation6], %s2052_s20, %s2052_s20, %s2053_s21  }
  0x29   : > { %p1912_p10 = pnand %p1911_p5, %p1905_p0 }
  0x2b   : > { %1915 = shalt.err (!%p1912_p10)
}
  0x2c   : > { %s2469_s6 = sld [smem:[#allocation20_spill]]  ;;  %s2187_s10 = sadd.s32 1, %s2048_s30  }
  0x2d   : > { %2470 = sst [smem:[#allocation17_spill]] %s2187_s10  ;;  %s35_s14 = sadd.s32 1, %s2044_s29 }
  0x2e   : > { %s32_s15 = ssub.s32 %s2048_s30, %s2187_s10  ;;  %p42_p1 = scmp.ne.s32.totalorder %s2044_s29, %s2040_s28 }
  0x2f   : > { %p33_p2 = scmp.eq.s32.totalorder %s32_s15, 0  ;;  %p43_p6 = scmp.eq.s32.totalorder %s2048_s30, 0 }
  0x30   : > { %p2471_p12 = scmp.eq.s32.totalorder %s2136_s9, 1  ;;  %p1791_p7 = scmp.lt.s32.totalorder %s2048_s30, 2 }
  0x31   : > { %s2203_s17 = scalar_select %p33_p2, %s2044_s29, %s35_s14  }
  0x32   : > { %1777 = dma.hbm_to_vmem [thread:$0]  (!%p2164_p11), %s2469_s6, 512, %s272_s18, [#allocation9], %s2052_s20, %s2052_s20, %s2053_s21  }
  0x33   : > { %p2197_p3 = por %p2471_p12, %p42_p1  ;;  %2473 = sst [smem:[#allocation18_spill]] %s2203_s17 }
  0x34   : > { %p44_p9 = por %p43_p6, %p42_p1  ;;  %s288_s19 = sand.u32 1, %s2044_s29  }
  0x35   : > { %s2472_s16 = scalar_select %p2197_p3, 1, 0 }
  0x36   : > { %s2206_s18 = sshll.u32 %s288_s19, 3  ;;  %s1622_s20 = sshll.u32 %s2048_s30, 7 }
  0x37   : > { %s2212_s23 = scalar_lea.hbm %s2445_s0, %s1622_s20  ;;  %s292_s24 = scalar_lea.vmem [#allocation2], %s2206_s18 }
  0x38   : > { %s299_s25 = sshll.u32 %s292_s24, 4  ;;  %p2217_p11 = pnand %p1791_p7, %p44_p9  ;;  %s2215_s25 = int_to_ptr.vmem [resolvable:$true] %s299_s25 }
  0x39   : > { %s2224_s4 = scalar_lea.hbm %s2446_s1, %s1622_s20  ;;  %s306_s21 = sand.u32 1, %s2048_s30  }
  0x3a   : > { %s289_s22 = scalar_lea.sflag [#allocation3], %s288_s19  ;;  %s1916_s6 = scalar_lea.hbm %s2212_s23, 128 }
  0x3b   : > { %p1917_p13 = scmp.ne.s32.totalorder %s2212_s23, %s1916_s6  ;;  %p1918_p0 = pneg %p2217_p11 }
  0x3c   : > { %s1921_s29 = scalar_lea.hbm %s2445_s0, 256  ;;  %p1922_p1 = scmp.lt.s32.totalorder %s2212_s23, %s2445_s0 }
  0x3d   : > { %p1919_p5 = pnand %p1918_p0, %p1917_p13  ;;  %p1923_p2 = scmp.lt.s32.totalorder %s1921_s29, %s1916_s6 }
  0x3f   : > { %p1920_p10 = pneg %p1919_p5  ;;  %p1924_p6 = por %p1923_p2, %p1922_p1 }
  0x41   : > { %p1925_p12 = pnand %p1924_p6, %p1920_p10 }
  0x43   : > { %1928 = shalt.err (!%p1925_p12)
}
  0x44   : > { %s1929_s19 = scalar_lea.vmem %s2215_s25, 128  ;;  %s2054_s17 = smov [#allocation2]  }
  0x45   : > { %p1930_p7 = scmp.ne.s32.totalorder %s2215_s25, %s1929_s19  ;;  %s1934_s20 = sshll.u32 %s2054_s17, 4  ;;  %s1935_s20 = int_to_ptr.vmem [resolvable:$false] %s1934_s20 }
  0x46   : > { %s1936_s15 = scalar_lea.vmem %s1935_s20, 256  ;;  %p1937_p5 = scmp.lt.s32.totalorder %s2215_s25, %s1935_s20 }
  0x47   : > { %p1932_p9 = pnand %p1930_p7, %p1918_p0  ;;  %p1938_p3 = scmp.lt.s32.totalorder %s1936_s15, %s1929_s19 }
  0x49   : > { %p1933_p13 = pneg %p1932_p9  ;;  %p1939_p4 = por %p1938_p3, %p1937_p5 }
  0x4b   : > { %p1940_p1 = pnand %p1939_p4, %p1933_p13 }
  0x4d   : > { %1943 = shalt.err (!%p1940_p1)
}
  0x4e   : > { %1781 = dma.hbm_to_vmem [thread:$0]  (!%p2217_p11), %s2212_s23, 128, %s2215_s25, %s289_s22  }
  0x4f   : > { %s310_s6 = scalar_lea.vmem [#allocation5], %s2206_s18  ;;  %s307_s10 = scalar_lea.sflag [#allocation6], %s306_s21 }
  0x50   : > { %s317_s29 = sshll.u32 %s310_s6, 4  ;;  %s1944_s24 = scalar_lea.hbm %s2224_s4, 128  ;;  %s318_s29 = int_to_ptr.vmem [resolvable:$true] %s317_s29 }
  0x51   : > { %p1945_p3 = scmp.ne.s32.totalorder %s2224_s4, %s1944_s24  ;;  %s1949_s17 = scalar_lea.hbm %s2446_s1, 256 }
  0x52   : > { %p1950_p2 = scmp.lt.s32.totalorder %s2224_s4, %s2446_s1  ;;  %p1951_p6 = scmp.lt.s32.totalorder %s1949_s17, %s1944_s24 }
  0x53   : > { %p1947_p4 = pnand %p1945_p3, %p1918_p0 }
  0x54   : > { %p1952_p12 = por %p1951_p6, %p1950_p2 }
  0x55   : > { %p1948_p10 = pneg %p1947_p4 }
  0x57   : > { %p1953_p7 = pnand %p1952_p12, %p1948_p10 }
  0x59   : > { %1956 = shalt.err (!%p1953_p7)
}
  0x5a   : > { %s1957_s18 = scalar_lea.vmem %s318_s29, 128  ;;  %s2055_s23 = smov [#allocation5]  }
  0x5b   : > { %p1958_p9 = scmp.ne.s32.totalorder %s318_s29, %s1957_s18  ;;  %s1962_s25 = sshll.u32 %s2055_s23, 4  ;;  %s1963_s25 = int_to_ptr.vmem [resolvable:$false] %s1962_s25 }
  0x5c   : > { %s1964_s21 = scalar_lea.vmem %s1963_s25, 256  ;;  %p1965_p1 = scmp.lt.s32.totalorder %s318_s29, %s1963_s25 }
  0x5d   : > { %p1960_p13 = pnand %p1958_p9, %p1918_p0  ;;  %p1966_p3 = scmp.lt.s32.totalorder %s1964_s21, %s1957_s18 }
  0x5f   : > { %p1961_p5 = pneg %p1960_p13  ;;  %p1967_p4 = por %p1966_p3, %p1965_p1 }
  0x61   : > { %p1968_p8 = pnand %p1967_p4, %p1961_p5 }
  0x63   : > { %1971 = shalt.err (!%p1968_p8)
}
  0x64   : > { %1784 = dma.hbm_to_vmem [thread:$0]  (!%p2217_p11), %s2224_s4, 128, %s318_s29, %s307_s10  }
  0x65   : > { %p2475_p10 = scmp.ne.s32.totalorder %s2466_s13, 0 }
  0x66   : > { %s2275_s22 = sand.u32 (!%p2475_p10), 1, %s2040_s28   ;;  %p2476_p0 = scmp.ne.s32.totalorder (!%p2475_p10), %s2464_s11, 0 }
  0x67   : > { %326 = sbr.rel (%p2475_p10) target bundleno = 2893 (0xb4d), region = 52  ;;  %s2278_s6 = sshll.u32 (!%p2475_p10), %s2275_s22, 3 }
  0x68   : > { %s329_s24 = scalar_lea.sflag (!%p2475_p10), [#allocation3], %s2275_s22  ;;  %s332_s14 = scalar_lea.vmem (!%p2475_p10), [#allocation2], %s2278_s6 }
  0x6c   : > { %2015 = dma.done.wait (%p2476_p0), %s329_s24, 128  }
  0x6d   : > { %2017 = vsyncadd (%p2476_p0), %s329_s24, 4294967168  ;;  %s337_s4 = sand.u32 1, %s2136_s9   ;;  %s341_s26 = scalar_lea.vmem [#allocation5], %s2278_s6 }
  0x6e   : > { %s338_s13 = scalar_lea.sflag [#allocation6], %s337_s4 }
  0x6f   : > { %2019 = dma.done.wait (%p2476_p0), %s338_s13, 128  }
  0x70   : > { %2021 = vsyncadd (%p2476_p0), %s338_s13, 4294967168  ;;  %p2477_p8 = scmp.eq.s32.totalorder %s2136_s9, 0 }
  0x72   : > { %2023 = dma.done.wait (%p2477_p8), [#allocation6], 512   ;;  %p2478_p11 = pmov %p2477_p8 }
  0x73   : > { %p2479_p2 = pmov %p2477_p8 }
  0x74   : > { %2025 = vsyncadd (%p2478_p11), [#allocation6], 4294966784 }
  0x75   : > { %2027 = dma.done.wait (%p2479_p2), [#allocation9], 512   ;;  %p2480_p6 = pmov %p2479_p2 }
  0x76   : > { %vm390_vm0 = vcmask 261120   ;;  %v2300_v0 = vld [vmem:[%s332_s14] sm:$0xff]  ;;  %v430_v7 = vld [vmem:[#allocation7 + $0x18] sm:$0xff]  ;;  %v2056_v8 = vmov 0.0   ;;  %v429_v9 = vld [vmem:[#allocation7 + $0x10] sm:$0xff]  ;;  %vm2057_vm1 = vmmov 0  }
  0x77   : > { %2029 = vsyncadd (%p2480_p6), [#allocation9], 4294966784  ;;  %v391_v1 = vsel %vm390_vm0, %v2300_v0, 0.0  ;;  %1686 = vmatprep.subr.mxu0 %v2056_v8  ;;  %1694 = vmatprep.mubr.msk.f32.mxu0 %vm2057_vm1, %v2056_v8  ;;  %v428_v10 = vld [vmem:[#allocation7 + $0x8] sm:$0xff]  ;;  %v427_v11 = vld [vmem:[#allocation7] sm:$0xff]  ;;  %s2058_s15 = smov 120  }
  0x78   : > { %392 = vadd.xlane.f32.xlu0 %v391_v1  ;;  %1687 = vmatpush3.msra.mxu0 %v430_v7  ;;  %v1631_v20 = vld [vmem:[%s2447_s2] ss:$0 sm:$0xff]  ;;  %s2059_s18 = smov 96   ;;  %s2060_s23 = smov 88   ;;  %vm521_vm4 = vcmask 64512   ;;  %v511_v33 = vld [vmem:[%s341_s26] sm:$0xff] }
  0x79   : > { %1697 = vmatprep.subr.mxu1 %v2056_v8  ;;  %1688 = vmatprep.subr.mxu0 %v2056_v8  ;;  %v1632_v23 = vld [vmem:[%s2448_s3] ss:$0 sm:$0xff]  ;;  %v1635_v34 = vadd.f32 -1.0, %v511_v33  ;;  %s2061_s25 = smov 56   ;;  %s2062_s21 = smov 64  }
  0x7a   : > { %1699 = vmatprep.mubr.msk.f32.mxu1 %vm2057_vm1, %v2056_v8  ;;  %1689 = vmatpush3.msra.mxu0 %v429_v9  ;;  %v1633_v26 = vld [vmem:[%s2450_s5] ss:$0 sm:$0xff]  ;;  %s2063_s24 = smov 80   ;;  %s2064_s14 = smov 112  }
  0x7b   : > { %1690 = vmatprep.subr.mxu0 %v2056_v8  ;;  %v2346_v35 = vmul.f32 1e+09, %v1635_v34  ;;  %v514_v1 = vld [vmem:[#allocation8] sm:$0xff]  ;;  %s2065_s4 = smov 48   ;;  %s2066_s13 = smov 104  }
  0x7c   : > { %1691 = vmatpush3.msra.mxu0 %v428_v10  ;;  %s2067_s26 = smov 72   ;;  %s2068_s11 = smov 40  }
  0x7d   : > { %1692 = vmatprep.subr.mxu0 %v2056_v8  ;;  %s1654_s19 = sshll.u32 %s2136_s9, 7  ;;  %s386_s17 = scalar_lea.vmem [#allocation10], %s2278_s6 }
  0x7e   : > { %1693 = vmatpush3.msra.mxu0 %v427_v11  ;;  %s1504_s20 = sshll.u32 %s386_s17, 4  ;;  %p2481_p7 = scmp.ne.s32.totalorder %s2472_s16, 0  ;;  %s1505_s20 = int_to_ptr.vmem [resolvable:$true] %s1504_s20 }
  0x7f   : > { %1707 = vmatprep.subr.mxu0 %v2056_v8 }
 0x101   : > { %v393_v2 = vpop.xlane.xlu0 %392 }
 0x102   : > { %v395_v3 = vmul.f32 0.03125, %v393_v2  ;;  %v515_v2 = vld [vmem:[#allocation8 + $0x8] sm:$0xff] }
 0x104   : > { %v396_v4 = vsub.f32 %v2300_v0, %v395_v3 }
 0x106   : > { %v397_v5 = vmul.f32 %v396_v4, %v396_v4  ;;  %v409_v21 = vmul.f32 %v1631_v20, %v396_v4 }
 0x108   : > { %v398_v6 = vsel %vm390_vm0, %v397_v5, 0.0 }
 0x109   : > { %399 = vadd.xlane.f32.xlu0 %v398_v6 }
 0x192   : > { %v400_v12 = vpop.xlane.xlu0 %399 }
 0x193   : > { %v402_v13 = vmul.f32 0.032258064, %v400_v12 }
 0x195   : > { %1844 = vrsqrt.f32 %v402_v13  ;;  %vm412_vm2 = vcmp.eq.f32.partialorder %v402_v13, inf  ;;  %v415_v16 = vand.u32 2147483648, %v402_v13  ;;  %vm414_vm3 = vcmp.eq.f32.partialorder %v402_v13, 0.0 }
 0x1a2   : > { %v1845_v14 = vpop.eup %1844 }
 0x1a3   : > { %v411_v15 = vmul.f32 %v1845_v14, %v402_v13 }
 0x1a5   : > { %v413_v17 = vsel %vm412_vm2, %v402_v13, %v411_v15 }
 0x1a6   : > { %v416_v18 = vsel %vm414_vm3, %v415_v16, %v413_v17 }
 0x1a7   : > { %v417_v19 = vadd.f32 1e-06, %v416_v18 }
 0x1a9   : > { %1846 = vrcp.f32 %v417_v19 }
 0x1b6   : > { %v1847_v22 = vpop.eup %1846 }
 0x1b7   : > { %v419_v24 = vmul.f32 %v1847_v22, %v409_v21 }
 0x1b9   : > { %v426_v25 = vadd.f32 %v1632_v23, %v419_v24 }
 0x1bb   : > { %1695 = vmatmul.mubr.msk.f32.vlgmr.msra.gmra.mxu0 %vm390_vm0, %v426_v25 }
 0x1bc   : > { %1709 = vmatprep.mubr.msk.f32.mxu0 %vm2057_vm1, %v2056_v8 }
 0x27b   : > { %v507_v27 = vpop.f32.mrf.mxu0 }
 0x27c   : > { %v2328_v28 = vadd.f32 %v1633_v26, %v507_v27 }
 0x27d   : > { %v1696_v29 = vpop.f32.mrf.mxu0 }
 0x27e   : > { %685 = vrot.lane.b32.xlu0 %v2328_v28, %s2058_s15  ;;  %519 = vrot.lane.b32.xlu1 %v2328_v28, %s2059_s18 }
 0x282   : > { %687 = vrot.lane.b32.xlu1 %v2328_v28, %s2060_s23  ;;  %s1502_s23 = scalar_lea.hbm %s2453_s8, %s1654_s19 }
 0x2f0   : > { %v520_v30 = vpop.permute.xlu1 %519  ;;  %v686_v32 = vpop.permute.xlu0 %685 }
 0x2f1   : > { %1698 = vmatpush3.xpose.msk.msra.mxu1 %vm521_vm4, %v520_v30 }
 0x2f2   : > { %1702 = vmatprep.subr.mxu1 %v2056_v8 }
 0x2f4   : > { %1700 = vmatmul.mubr.msk.f32.vlgmr.msra.gmra.mxu1 %vm521_vm4, %v2328_v28  ;;  %v688_v31 = vpop.permute.xlu1 %687 }
 0x2f5   : > { %1708 = vmatpush3.xpose.msk.msra.mxu0 %vm521_vm4, %v688_v31  ;;  %1704 = vmatprep.mubr.msk.f32.mxu1 %vm2057_vm1, %v2056_v8 }
 0x2f6   : > { %1717 = vmatprep.subr.mxu0 %v2056_v8 }
 0x2f8   : > { %1710 = vmatmul.mubr.msk.f32.vlgmr.msra.gmra.mxu0 %vm521_vm4, %v686_v32  ;;  %v516_v32 = vld [vmem:[#allocation8 + $0x10] sm:$0xff] }
 0x2f9   : > { %1719 = vmatprep.mubr.msk.f32.mxu0 %vm2057_vm1, %v2056_v8  ;;  %1718 = vmatpush3.msra.mxu0 %v515_v2 }
 0x2fa   : > { %1727 = vmatprep.subr.mxu0 %v2056_v8 }
 0x3b4   : > { %v592_v36 = vpop.f32.mrf.mxu1 }
 0x3b5   : > { %v596_v37 = vmul.f32 0.35355338, %v592_v36 }
 0x3b6   : > { %v1701_v38 = vpop.f32.mrf.mxu1 }
 0x3b7   : > { %v597_v39 = vadd.f32 %v596_v37, %v2346_v35 }
 0x3b8   : > { %v759_v40 = vpop.f32.mrf.mxu0 }
 0x3b9   : > { %v763_v41 = vmul.f32 0.35355338, %v759_v40  ;;  %v598_v42 = vsel %vm521_vm4, %v597_v39, -inf }
 0x3ba   : > { %599 = vmax.xlane.f32.xlu1 %v598_v42  ;;  %v1711_v43 = vpop.f32.mrf.mxu0 }
 0x3bb   : > { %v764_v44 = vadd.f32 %v763_v41, %v2346_v35 }
 0x3bd   : > { %v765_v45 = vsel %vm521_vm4, %v764_v44, -inf }
 0x3be   : > { %766 = vmax.xlane.f32.xlu0 %v765_v45 }
 0x3d4   : > { %776 = vrot.lane.b32.xlu0 %v2328_v28, %s2061_s25  ;;  %s1491_s25 = scalar_lea.sflag [#allocation4], %s2275_s22 }
 0x443   : > { %v600_v46 = vpop.xlane.xlu1 %599 }
 0x444   : > { %v601_v47 = vsub.f32 %v597_v39, %v600_v46  ;;  %v517_v46 = vld [vmem:[#allocation8 + $0x18] sm:$0xff] }
 0x446   : > { %v602_v48 = vmul.f32 1.442695, %v601_v47 }
 0x447   : > { %v767_v49 = vpop.xlane.xlu0 %766 }
 0x448   : > { %1848 = vpow2.f32 %v602_v48  ;;  %v768_v50 = vsub.f32 %v764_v44, %v767_v49 }
 0x44a   : > { %v769_v51 = vmul.f32 1.442695, %v768_v50 }
 0x44b   : > { %v777_v61 = vpop.permute.xlu0 %776 }
 0x44c   : > { %1850 = vpow2.f32 %v769_v51 }
 0x455   : > { %v1849_v52 = vpop.eup %1848 }
 0x456   : > { %v604_v53 = vsel %vm521_vm4, %v1849_v52, 0.0 }
 0x457   : > { %605 = vadd.xlane.f32.xlu1 %v604_v53 }
 0x459   : > { %v1851_v54 = vpop.eup %1850 }
 0x45a   : > { %v771_v55 = vsel %vm521_vm4, %v1851_v54, 0.0 }
 0x45b   : > { %772 = vadd.xlane.f32.xlu1 %v771_v55 }
 0x46c   : > { %609 = vrot.lane.b32.xlu1 %v2328_v28, %s2062_s21  ;;  %s1972_s21 = scalar_lea.vmem %s1505_s20, 128 }
 0x46d   : > { %p1973_p12 = scmp.ne.s32.totalorder %s1505_s20, %s1972_s21 }
 0x46f   : > { %p1974_p9 = pnand %p1973_p12, %p2481_p7 }
 0x470   : > { %1000 = vrot.lane.b32.xlu1 %v2328_v28, %s2063_s24  ;;  %s2069_s24 = smov [#allocation10]  }
 0x471   : > { %p1975_p13 = pneg %p1974_p9  ;;  %s1976_s9 = sshll.u32 %s2069_s24, 4  ;;  %s1977_s9 = int_to_ptr.vmem [resolvable:$false] %s1976_s9 }
 0x472   : > { %s1978_s6 = scalar_lea.vmem %s1977_s9, 256  ;;  %p1979_p5 = scmp.lt.s32.totalorder %s1505_s20, %s1977_s9 }
 0x473   : > { %p1980_p1 = scmp.lt.s32.totalorder %s1978_s6, %s1972_s21 }
 0x474   : > { %998 = vrot.lane.b32.xlu1 %v2328_v28, %s2064_s14 }
 0x475   : > { %p1981_p3 = por %p1980_p1, %p1979_p5 }
 0x477   : > { %p1982_p4 = pnand %p1981_p3, %p1975_p13 }
 0x4e0   : > { %v606_v56 = vpop.xlane.xlu1 %605 }
 0x4e1   : > { %1852 = vrcp.f32 %v606_v56 }
 0x4e4   : > { %v773_v57 = vpop.xlane.xlu1 %772 }
 0x4e5   : > { %1854 = vrcp.f32 %v773_v57 }
 0x4e8   : > { %v610_v58 = vpop.permute.xlu1 %609 }
 0x4e9   : > { %1703 = vmatpush3.msra.mxu1 %v610_v58 }
 0x4ea   : > { %1712 = vmatprep.subr.mxu1 %v2056_v8 }
 0x4ec   : > { %v1001_v4 = vpop.permute.xlu1 %1000 }
 0x4ee   : > { %v1853_v59 = vpop.eup %1852 }
 0x4ef   : > { %v608_v60 = vmul.f32 %v1853_v59, %v1849_v52 }
 0x4f0   : > { %v999_v9 = vpop.permute.xlu1 %998 }
 0x4f1   : > { %1705 = vmatmul.mubr.msk.f32.vlgmr.msra.gmra.mxu1 %vm521_vm4, %v608_v60 }
 0x4f2   : > { %v1855_v62 = vpop.eup %1854  ;;  %1713 = vmatpush3.msra.mxu1 %v777_v61  ;;  %1714 = vmatprep.mubr.msk.f32.mxu1 %vm2057_vm1, %v2056_v8 }
 0x4f3   : > { %v775_v63 = vmul.f32 %v1855_v62, %v1851_v54  ;;  %1722 = vmatprep.subr.mxu1 %v2056_v8  ;;  %v1652_v54 = vld [vmem:[%s2452_s7] ss:$0 sm:$0xff] }
 0x4f5   : > { %1715 = vmatmul.mubr.msk.f32.vlgmr.msra.gmra.mxu1 %vm521_vm4, %v775_v63 }
 0x4f6   : > { %1724 = vmatprep.mubr.msk.f32.mxu1 %vm2057_vm1, %v2056_v8  ;;  %1723 = vmatpush3.msra.mxu1 %v514_v1 }
 0x4f7   : > { %1732 = vmatprep.subr.mxu1 %v2056_v8 }
 0x5b1   : > { %v681_v3 = vpop.f32.mrf.mxu1 }
 0x5b2   : > { %1725 = vmatmul.mubr.msk.f32.vlgmr.msra.gmra.mxu1 %vm521_vm4, %v681_v3 }
 0x5b3   : > { %v1706_v5 = vpop.f32.mrf.mxu1  ;;  %1734 = vmatprep.mubr.msk.f32.mxu1 %vm2057_vm1, %v2056_v8 }
 0x5b5   : > { %v848_v6 = vpop.f32.mrf.mxu1 }
 0x5b6   : > { %1720 = vmatmul.mubr.msk.f32.vlgmr.msra.gmra.mxu0 %vm521_vm4, %v848_v6 }
 0x5b7   : > { %1728 = vmatpush3.xpose.msk.msra.mxu0 %vm521_vm4, %v1001_v4  ;;  %v1716_v7 = vpop.f32.mrf.mxu1  ;;  %1729 = vmatprep.mubr.msk.f32.mxu0 %vm2057_vm1, %v2056_v8 }
 0x5b8   : > { %1737 = vmatprep.subr.mxu0 %v2056_v8 }
 0x5ba   : > { %1730 = vmatmul.mubr.msk.f32.vlgmr.msra.gmra.mxu0 %vm521_vm4, %v999_v9 }
 0x5bb   : > { %1739 = vmatprep.mubr.msk.f32.mxu0 %vm2057_vm1, %v2056_v8  ;;  %1738 = vmatpush3.msra.mxu0 %v516_v32 }
 0x5bc   : > { %1747 = vmatprep.subr.mxu0 %v2056_v8 }
 0x672   : > { %v994_v10 = vpop.f32.mrf.mxu1 }
 0x674   : > { %v1726_v11 = vpop.f32.mrf.mxu1 }
 0x676   : > { %v921_v12 = vpop.f32.mrf.mxu0 }
 0x677   : > { %v995_v13 = vadd.f32 %v994_v10, %v921_v12 }
 0x678   : > { %v1721_v14 = vpop.f32.mrf.mxu0 }
 0x67a   : > { %v1072_v15 = vpop.f32.mrf.mxu0 }
 0x67b   : > { %v1076_v16 = vmul.f32 0.35355338, %v1072_v15 }
 0x67c   : > { %v1731_v17 = vpop.f32.mrf.mxu0 }
 0x67d   : > { %v1077_v18 = vadd.f32 %v1076_v16, %v2346_v35 }
 0x67f   : > { %v1078_v19 = vsel %vm521_vm4, %v1077_v18, -inf }
 0x680   : > { %1079 = vmax.xlane.f32.xlu1 %v1078_v19 }
 0x691   : > { %1089 = vrot.lane.b32.xlu1 %v2328_v28, %s2065_s4 }
 0x695   : > { %1239 = vrot.lane.b32.xlu1 %v2328_v28, %s2066_s13 }
 0x709   : > { %v1080_v20 = vpop.xlane.xlu1 %1079 }
 0x70a   : > { %v1081_v21 = vsub.f32 %v1077_v18, %v1080_v20 }
 0x70c   : > { %v1082_v22 = vmul.f32 1.442695, %v1081_v21 }
 0x70d   : > { %v1090_v23 = vpop.permute.xlu1 %1089 }
 0x70e   : > { %1856 = vpow2.f32 %v1082_v22  ;;  %1733 = vmatpush3.msra.mxu1 %v1090_v23 }
 0x70f   : > { %1742 = vmatprep.subr.mxu1 %v2056_v8 }
 0x711   : > { %v1240_v31 = vpop.permute.xlu1 %1239 }
 0x71b   : > { %v1857_v24 = vpop.eup %1856 }
 0x71c   : > { %v1084_v25 = vsel %vm521_vm4, %v1857_v24, 0.0 }
 0x71d   : > { %1085 = vadd.xlane.f32.xlu0 %v1084_v25 }
 0x733   : > { %1241 = vrot.lane.b32.xlu0 %v2328_v28, %s2067_s26 }
 0x7a6   : > { %v1086_v26 = vpop.xlane.xlu0 %1085 }
 0x7a7   : > { %1858 = vrcp.f32 %v1086_v26 }
 0x7aa   : > { %v1242_v30 = vpop.permute.xlu0 %1241 }
 0x7b4   : > { %v1859_v27 = vpop.eup %1858 }
 0x7b5   : > { %v1088_v29 = vmul.f32 %v1859_v27, %v1857_v24 }
 0x7b7   : > { %1735 = vmatmul.mubr.msk.f32.vlgmr.msra.gmra.mxu1 %vm521_vm4, %v1088_v29 }
 0x7b8   : > { %1743 = vmatpush3.xpose.msk.msra.mxu1 %vm521_vm4, %v1242_v30  ;;  %1744 = vmatprep.mubr.msk.f32.mxu1 %vm2057_vm1, %v2056_v8 }
 0x7b9   : > { %1752 = vmatprep.subr.mxu1 %v2056_v8 }
 0x7bb   : > { %1745 = vmatmul.mubr.msk.f32.vlgmr.msra.gmra.mxu1 %vm521_vm4, %v1240_v31 }
 0x7bc   : > { %1754 = vmatprep.mubr.msk.f32.mxu1 %vm2057_vm1, %v2056_v8  ;;  %1753 = vmatpush3.msra.mxu1 %v517_v46 }
 0x877   : > { %v1161_v33 = vpop.f32.mrf.mxu1 }
 0x878   : > { %1740 = vmatmul.mubr.msk.f32.vlgmr.msra.gmra.mxu0 %vm521_vm4, %v1161_v33 }
 0x879   : > { %v1736_v34 = vpop.f32.mrf.mxu1  ;;  %1749 = vmatprep.mubr.msk.f32.mxu0 %vm2057_vm1, %v2056_v8 }
 0x87b   : > { %v1313_v36 = vpop.f32.mrf.mxu1 }
 0x87c   : > { %v1317_v37 = vmul.f32 0.35355338, %v1313_v36 }
 0x87d   : > { %v1746_v38 = vpop.f32.mrf.mxu1 }
 0x87e   : > { %v1318_v39 = vadd.f32 %v1317_v37, %v2346_v35 }
 0x880   : > { %v1319_v40 = vsel %vm521_vm4, %v1318_v39, -inf }
 0x881   : > { %1320 = vmax.xlane.f32.xlu1 %v1319_v40 }
 0x90a   : > { %v1321_v41 = vpop.xlane.xlu1 %1320 }
 0x90b   : > { %v1322_v42 = vsub.f32 %v1318_v39, %v1321_v41 }
 0x90d   : > { %v1323_v43 = vmul.f32 1.442695, %v1322_v42 }
 0x90f   : > { %1860 = vpow2.f32 %v1323_v43 }
 0x91c   : > { %v1861_v44 = vpop.eup %1860 }
 0x91d   : > { %v1325_v45 = vsel %vm521_vm4, %v1861_v44, 0.0 }
 0x91e   : > { %1326 = vadd.xlane.f32.xlu0 %v1325_v45 }
 0x934   : > { %1330 = vrot.lane.b32.xlu0 %v2328_v28, %s2068_s11 }
 0x938   : > { %v1234_v8 = vpop.f32.mrf.mxu0 }
 0x939   : > { %v1238_v47 = vadd.f32 %v1234_v8, %v995_v13 }
 0x93a   : > { %v1741_v35 = vpop.f32.mrf.mxu0 }
 0x9a7   : > { %v1327_v48 = vpop.xlane.xlu0 %1326 }
 0x9a8   : > { %1862 = vrcp.f32 %v1327_v48 }
 0x9ab   : > { %v1331_v49 = vpop.permute.xlu0 %1330 }
 0x9ac   : > { %1748 = vmatpush3.msra.mxu0 %v1331_v49 }
 0x9b5   : > { %v1863_v50 = vpop.eup %1862 }
 0x9b6   : > { %v1329_v51 = vmul.f32 %v1863_v50, %v1861_v44 }
 0x9b8   : > { %1750 = vmatmul.mubr.msk.f32.vlgmr.msra.gmra.mxu0 %vm521_vm4, %v1329_v51 }
 0xa78   : > { %v1402_v52 = vpop.f32.mrf.mxu0 }
 0xa79   : > { %1755 = vmatmul.mubr.msk.f32.vlgmr.msra.gmra.mxu1 %vm521_vm4, %v1402_v52 }
 0xa7a   : > { %v1751_v28 = vpop.f32.mrf.mxu0 }
 0xb39   : > { %v1475_v53 = vpop.f32.mrf.mxu1 }
 0xb3a   : > { %v1479_v55 = vadd.f32 %v1475_v53, %v1238_v47 }
 0xb3b   : > { %v1756_v56 = vpop.f32.mrf.mxu1 }
 0xb3c   : > { %v1487_v57 = vadd.f32 %v1652_v54, %v1479_v55 }
 0xb3e   : > { %v1488_v58 = vadd.f32 %v1487_v57, %v2300_v0 }
 0xb40   : > { %1489 = vst.msk [vmem:[%s386_s17] sm:$0xff] %vm390_vm0, %v1488_v58 }
 0xb41   : > { %1985 = shalt.err (!%p1982_p4)
}
 0xb42   : > { %s1986_s14 = scalar_lea.hbm %s1502_s23, 128  ;;  %s1990_s13 = scalar_lea.hbm %s2453_s8, 256 }
 0xb43   : > { %p1987_p10 = scmp.ne.s32.totalorder %s1502_s23, %s1986_s14  ;;  %p1991_p11 = scmp.lt.s32.totalorder %s1502_s23, %s2453_s8 }
 0xb44   : > { %p1992_p2 = scmp.lt.s32.totalorder %s1990_s13, %s1986_s14 }
 0xb45   : > { %p1988_p0 = pnand %p1987_p10, %p2481_p7 }
 0xb46   : > { %p1993_p6 = por %p1992_p2, %p1991_p11 }
 0xb47   : > { %p1989_p8 = pneg %p1988_p0 }
 0xb49   : > { %p1994_p12 = pnand %p1993_p6, %p1989_p8 }
 0xb4b   : > { %1997 = shalt.err (!%p1994_p12)
}
 0xb4c   : > { %1769 = dma.vmem_to_hbm [thread:$0]  (%p2481_p7), %s1505_s20, 128, %s1502_s23, %s1491_s25  }
 0xb4d PF: > { %s1516_s29 = sand.u32 1, %s2036_s27   ;;  %p2482_p9 = scmp.ne.s32.totalorder %s2465_s12, 0 }
 0xb4e   : > { %p2483_p13 = scmp.ge.s32.totalorder %s2048_s30, 2  ;;  %s1517_s10 = scalar_lea.sflag [#allocation4], %s1516_s29 }
 0xb50   : > { %p1786_p5 = pnand %p2483_p13, %p2482_p9 }
 0xb52   : > { %p1787_p1 = pneg %p1786_p5 }
 0xb54   : > { %2031 = dma.done.wait (%p1787_p1), %s1517_s10, 128  }
 0xb55   : > { %2033 = vsyncadd (%p1787_p1), %s1517_s10, 4294967168  ;;  %s2484_s30 = sld [smem:[#allocation17_spill]]  ;;  %s2487_s27 = smov %s2040_s28 }
 0xb56   : > { %s2485_s19 = sld [smem:[#allocation16_spill]] }
 0xb57   : > { %s2486_s29 = sld [smem:[#allocation18_spill]] }
 0xb5b   : > { %p25_p3 = scmp.ge.s32.totalorder %s2484_s30, 4  }
 0xb5c   : > { %s2488_s28 = smov %s2485_s19 }
 0xb5d   :  { %27 = sbr.rel (!%p25_p3) target bundleno = 11 (0xb), region = 118 }
 0xb62   :  { %1522 = vsyncpa [#allocation3], 1 }
 0xb63   :  { %1524 = vsyncpa [#allocation3 + $0x1], 1 }
 0xb64   :  { %1525 = vsyncpa [#allocation6], 1 }
 0xb65   :  { %1527 = vsyncpa [#allocation6 + $0x1], 1 }
 0xb66   :  { %1528 = vsyncpa [#allocation9], 1 }
 0xb67   :  { %1529 = vsyncpa [#allocation4], 1 }
 0xb68   :  { %1531 = vsyncpa [#allocation4 + $0x1], 1 }

// kernel: tpu_custom_call.1
= control target key start
LH: loop header
LB: loop body
LE: loop exit
PB: predicated region body
PF: predicated region fallthrough
CT: control target
= control target key end

     0   :  { %s2445_s0 = inlined_call_operand.hbm [shape: f32[2,8,32], index: 0, kind: input, shape index: {}]   ;;  %s2446_s1 = inlined_call_operand.hbm [shape: f32[2,8,8], index: 1, kind: input, shape index: {}]   ;;  %s2447_s2 = inlined_call_operand.vmem [shape: f32[1,32], index: 2, kind: input, shape index: {}]   ;;  %s2448_s3 = inlined_call_operand.vmem [shape: f32[1,32], index: 3, kind: input, shape index: {}]   ;;  %s2449_s4 = inlined_call_operand.hbm [shape: f32[32,96], index: 4, kind: input, shape index: {}]   ;;  %s2450_s5 = inlined_call_operand.vmem [shape: f32[1,96], index: 5, kind: input, shape index: {}]   ;;  %s2451_s6 = inlined_call_operand.hbm [shape: f32[32,32], index: 6, kind: input, shape index: {}]   ;;  %s2452_s7 = inlined_call_operand.vmem [shape: f32[1,32], index: 7, kind: input, shape index: {}]   ;;  %s2453_s8 = inlined_call_operand.hbm [shape: f32[2,8,32], index: 8, kind: output, shape index: {}]  }
   0x1   :  { %2461 = sst [smem:[#allocation19_spill]] %s2449_s4 }
   0x2   :  { %2462 = sst [smem:[#allocation20_spill]] %s2451_s6 }
   0x3   :  { %13 = vsyncpa [#allocation3], 0 }
   0x4   :  { %15 = vsyncpa [#allocation3 + $0x1], 0 }
   0x5   :  { %16 = vsyncpa [#allocation6], 0 }
   0x6   :  { %18 = vsyncpa [#allocation6 + $0x1], 0 }
   0x7   :  { %19 = vsyncpa [#allocation9], 0 }
   0x8   :  { %20 = vsyncpa [#allocation4], 0 }
   0x9   :  { %22 = vsyncpa [#allocation4 + $0x1], 0  ;;  %s2115_s27 = smov 0   ;;  %s2117_s28 = smov 0  }
   0xa   :  { %s2119_s29 = smov 0   ;;  %s2121_s30 = smov 0  }
   0xb LB: > { %2463 = sst [smem:[#allocation16_spill]] %s2044_s29  ;;  %s2136_s9 = sadd.s32 4294967295, %s2048_s30   ;;  %s2048_s30 = sphi %s2121_s30, %s2484_s30   ;;  %s2044_s29 = sphi %s2119_s29, %s2486_s29   ;;  %s2040_s28 = sphi %s2117_s28, %s2488_s28   ;;  %s2036_s27 = sphi %s2115_s27, %s2487_s27  }
   0xc   : > { %s1616_s10 = sadd.s32 4294967294, %s2048_s30   ;;  %p48_p0 = scmp.ne.s32.totalorder %s2040_s28, %s2036_s27 }
   0xd   : > { %p2454_p1 = scmp.eq.s32.totalorder %s2136_s9, 0  ;;  %p230_p3 = scmp.eq.s32.totalorder %s1616_s10, 1 }
   0xe   : > { %p1617_p5 = scmp.ge.s32.totalorder %s2048_s30, 1  ;;  %p237_p7 = scmp.lt.s32.totalorder %s2048_s30, 3 }
   0xf   : > { %p2145_p4 = por %p2454_p1, %p48_p0  ;;  %p2150_p6 = por %p230_p3, %p48_p0 }
  0x10   : > { %p2155_p8 = pnand %p1617_p5, %p237_p7  ;;  %s2050_s14 = smov [#allocation7]  }
  0x11   : > { %s2464_s11 = scalar_select %p2145_p4, 1, 0 }
  0x12   : > { %s2465_s12 = scalar_select %p2150_p6, 1, 0 }
  0x13   : > { %s2466_s13 = scalar_select %p2155_p8, 1, 0 }
  0x14   : > { %s255_s15 = sshll.u32 %s2050_s14, 4  ;;  %p1771_p9 = pneg %p2155_p8  ;;  %s256_s15 = int_to_ptr.vmem [resolvable:$true] %s255_s15 }
  0x15   : > { %s2051_s17 = smov [#allocation8]   ;;  %s1875_s19 = scalar_lea.vmem %s256_s15, 512 }
  0x16   : > { %p2164_p11 = pnand %p1771_p9, %p2454_p1  ;;  %s271_s18 = sshll.u32 %s2051_s17, 4  ;;  %s272_s18 = int_to_ptr.vmem [resolvable:$true] %s271_s18 }
  0x17   : > { %p1876_p13 = scmp.ne.s32.totalorder %s256_s15, %s1875_s19  ;;  %p1883_p5 = scmp.lt.s32.totalorder %s256_s15, %s256_s15 }
  0x18   : > { %p1866_p12 = pneg %p2164_p11  ;;  %p1884_p7 = scmp.lt.s32.totalorder %s1875_s19, %s1875_s19 }
  0x1a   : > { %p1878_p0 = pnand %p1876_p13, %p1866_p12  ;;  %p1885_p10 = por %p1884_p7, %p1883_p5 }
  0x1c   : > { %p1879_p3 = pneg %p1878_p0 }
  0x1e   : > { %p1886_p9 = pnand %p1885_p10, %p1879_p3 }
  0x20   : > { %1889 = shalt.err (!%p1886_p9)
}
  0x21   : > { %s2052_s20 = smov 128   ;;  %s2053_s21 = smov 8  }
  0x22   : > { %s2468_s4 = sld [smem:[#allocation19_spill]]  ;;  %s1901_s24 = scalar_lea.vmem %s272_s18, 512 }
  0x23   : > { %p1902_p1 = scmp.ne.s32.totalorder %s272_s18, %s1901_s24  ;;  %p1909_p2 = scmp.lt.s32.totalorder %s272_s18, %s272_s18 }
  0x24   : > { %p1910_p6 = scmp.lt.s32.totalorder %s1901_s24, %s1901_s24 }
  0x25   : > { %p1904_p13 = pnand %p1902_p1, %p1866_p12 }
  0x26   : > { %p1911_p5 = por %p1910_p6, %p1909_p2 }
  0x27   : > { %p1905_p0 = pneg %p1904_p13 }
  0x28   : > { %1774 = dma.hbm_to_vmem [thread:$0]  (!%p2164_p11), %s2468_s4, 512, %s256_s15, [#allocation6], %s2052_s20, %s2052_s20, %s2053_s21  }
  0x29   : > { %p1912_p10 = pnand %p1911_p5, %p1905_p0 }
  0x2b   : > { %1915 = shalt.err (!%p1912_p10)
}
  0x2c   : > { %s2469_s6 = sld [smem:[#allocation20_spill]]  ;;  %s2187_s10 = sadd.s32 1, %s2048_s30  }
  0x2d   : > { %2470 = sst [smem:[#allocation17_spill]] %s2187_s10  ;;  %s35_s14 = sadd.s32 1, %s2044_s29 }
  0x2e   : > { %s32_s15 = ssub.s32 %s2048_s30, %s2187_s10  ;;  %p42_p1 = scmp.ne.s32.totalorder %s2044_s29, %s2040_s28 }
  0x2f   : > { %p33_p2 = scmp.eq.s32.totalorder %s32_s15, 0  ;;  %p43_p6 = scmp.eq.s32.totalorder %s2048_s30, 0 }
  0x30   : > { %p2471_p12 = scmp.eq.s32.totalorder %s2136_s9, 1  ;;  %p1791_p7 = scmp.lt.s32.totalorder %s2048_s30, 2 }
  0x31   : > { %s2203_s17 = scalar_select %p33_p2, %s2044_s29, %s35_s14  }
  0x32   : > { %1777 = dma.hbm_to_vmem [thread:$0]  (!%p2164_p11), %s2469_s6, 512, %s272_s18, [#allocation9], %s2052_s20, %s2052_s20, %s2053_s21  }
  0x33   : > { %p2197_p3 = por %p2471_p12, %p42_p1  ;;  %2473 = sst [smem:[#allocation18_spill]] %s2203_s17 }
  0x34   : > { %p44_p9 = por %p43_p6, %p42_p1  ;;  %s288_s19 = sand.u32 1, %s2044_s29  }
  0x35   : > { %s2472_s16 = scalar_select %p2197_p3, 1, 0 }
  0x36   : > { %s2206_s18 = sshll.u32 %s288_s19, 3  ;;  %s1622_s20 = sshll.u32 %s2048_s30, 7 }
  0x37   : > { %s2212_s23 = scalar_lea.hbm %s2445_s0, %s1622_s20  ;;  %s292_s24 = scalar_lea.vmem [#allocation2], %s2206_s18 }
  0x38   : > { %s299_s25 = sshll.u32 %s292_s24, 4  ;;  %p2217_p11 = pnand %p1791_p7, %p44_p9  ;;  %s2215_s25 = int_to_ptr.vmem [resolvable:$true] %s299_s25 }
  0x39   : > { %s2224_s4 = scalar_lea.hbm %s2446_s1, %s1622_s20  ;;  %s306_s21 = sand.u32 1, %s2048_s30  }
  0x3a   : > { %s289_s22 = scalar_lea.sflag [#allocation3], %s288_s19  ;;  %s1916_s6 = scalar_lea.hbm %s2212_s23, 128 }
  0x3b   : > { %p1917_p13 = scmp.ne.s32.totalorder %s2212_s23, %s1916_s6  ;;  %p1918_p0 = pneg %p2217_p11 }
  0x3c   : > { %s1921_s29 = scalar_lea.hbm %s2445_s0, 256  ;;  %p1922_p1 = scmp.lt.s32.totalorder %s2212_s23, %s2445_s0 }
  0x3d   : > { %p1919_p5 = pnand %p1918_p0, %p1917_p13  ;;  %p1923_p2 = scmp.lt.s32.totalorder %s1921_s29, %s1916_s6 }
  0x3f   : > { %p1920_p10 = pneg %p1919_p5  ;;  %p1924_p6 = por %p1923_p2, %p1922_p1 }
  0x41   : > { %p1925_p12 = pnand %p1924_p6, %p1920_p10 }
  0x43   : > { %1928 = shalt.err (!%p1925_p12)
}
  0x44   : > { %s1929_s19 = scalar_lea.vmem %s2215_s25, 128  ;;  %s2054_s17 = smov [#allocation2]  }
  0x45   : > { %p1930_p7 = scmp.ne.s32.totalorder %s2215_s25, %s1929_s19  ;;  %s1934_s20 = sshll.u32 %s2054_s17, 4  ;;  %s1935_s20 = int_to_ptr.vmem [resolvable:$false] %s1934_s20 }
  0x46   : > { %s1936_s15 = scalar_lea.vmem %s1935_s20, 256  ;;  %p1937_p5 = scmp.lt.s32.totalorder %s2215_s25, %s1935_s20 }
  0x47   : > { %p1932_p9 = pnand %p1930_p7, %p1918_p0  ;;  %p1938_p3 = scmp.lt.s32.totalorder %s1936_s15, %s1929_s19 }
  0x49   : > { %p1933_p13 = pneg %p1932_p9  ;;  %p1939_p4 = por %p1938_p3, %p1937_p5 }
  0x4b   : > { %p1940_p1 = pnand %p1939_p4, %p1933_p13 }
  0x4d   : > { %1943 = shalt.err (!%p1940_p1)
}
  0x4e   : > { %1781 = dma.hbm_to_vmem [thread:$0]  (!%p2217_p11), %s2212_s23, 128, %s2215_s25, %s289_s22  }
  0x4f   : > { %s310_s6 = scalar_lea.vmem [#allocation5], %s2206_s18  ;;  %s307_s10 = scalar_lea.sflag [#allocation6], %s306_s21 }
  0x50   : > { %s317_s29 = sshll.u32 %s310_s6, 4  ;;  %s1944_s24 = scalar_lea.hbm %s2224_s4, 128  ;;  %s318_s29 = int_to_ptr.vmem [resolvable:$true] %s317_s29 }
  0x51   : > { %p1945_p3 = scmp.ne.s32.totalorder %s2224_s4, %s1944_s24  ;;  %s1949_s17 = scalar_lea.hbm %s2446_s1, 256 }
  0x52   : > { %p1950_p2 = scmp.lt.s32.totalorder %s2224_s4, %s2446_s1  ;;  %p1951_p6 = scmp.lt.s32.totalorder %s1949_s17, %s1944_s24 }
  0x53   : > { %p1947_p4 = pnand %p1945_p3, %p1918_p0 }
  0x54   : > { %p1952_p12 = por %p1951_p6, %p1950_p2 }
  0x55   : > { %p1948_p10 = pneg %p1947_p4 }
  0x57   : > { %p1953_p7 = pnand %p1952_p12, %p1948_p10 }
  0x59   : > { %1956 = shalt.err (!%p1953_p7)
}
  0x5a   : > { %s1957_s18 = scalar_lea.vmem %s318_s29, 128  ;;  %s2055_s23 = smov [#allocation5]  }
  0x5b   : > { %p1958_p9 = scmp.ne.s32.totalorder %s318_s29, %s1957_s18  ;;  %s1962_s25 = sshll.u32 %s2055_s23, 4  ;;  %s1963_s25 = int_to_ptr.vmem [resolvable:$false] %s1962_s25 }
  0x5c   : > { %s1964_s21 = scalar_lea.vmem %s1963_s25, 256  ;;  %p1965_p1 = scmp.lt.s32.totalorder %s318_s29, %s1963_s25 }
  0x5d   : > { %p1960_p13 = pnand %p1958_p9, %p1918_p0  ;;  %p1966_p3 = scmp.lt.s32.totalorder %s1964_s21, %s1957_s18 }
  0x5f   : > { %p1961_p5 = pneg %p1960_p13  ;;  %p1967_p4 = por %p1966_p3, %p1965_p1 }
  0x61   : > { %p1968_p8 = pnand %p1967_p4, %p1961_p5 }
  0x63   : > { %1971 = shalt.err (!%p1968_p8)
}
  0x64   : > { %1784 = dma.hbm_to_vmem [thread:$0]  (!%p2217_p11), %s2224_s4, 128, %s318_s29, %s307_s10  }
  0x65   : > { %p2475_p10 = scmp.ne.s32.totalorder %s2466_s13, 0 }
  0x66   : > { %s2275_s22 = sand.u32 (!%p2475_p10), 1, %s2040_s28   ;;  %p2476_p0 = scmp.ne.s32.totalorder (!%p2475_p10), %s2464_s11, 0 }
  0x67   : > { %326 = sbr.rel (%p2475_p10) target bundleno = 2893 (0xb4d), region = 52  ;;  %s2278_s6 = sshll.u32 (!%p2475_p10), %s2275_s22, 3 }
  0x68   : > { %s329_s24 = scalar_lea.sflag (!%p2475_p10), [#allocation3], %s2275_s22  ;;  %s332_s14 = scalar_lea.vmem (!%p2475_p10), [#allocation2], %s2278_s6 }
  0x6c   : > { %2015 = dma.done.wait (%p2476_p0), %s329_s24, 128  }
  0x6d   : > { %2017 = vsyncadd (%p2476_p0), %s329_s24, 4294967168  ;;  %s337_s4 = sand.u32 1, %s2136_s9   ;;  %s341_s26 = scalar_lea.vmem [#allocation5], %s2278_s6 }
  0x6e   : > { %s338_s13 = scalar_lea.sflag [#allocation6], %s337_s4 }
  0x6f   : > { %2019 = dma.done.wait (%p2476_p0), %s338_s13, 128  }
  0x70   : > { %2021 = vsyncadd (%p2476_p0), %s338_s13, 4294967168  ;;  %p2477_p8 = scmp.eq.s32.totalorder %s2136_s9, 0 }
  0x72   : > { %2023 = dma.done.wait (%p2477_p8), [#allocation6], 512   ;;  %p2478_p11 = pmov %p2477_p8 }
  0x73   : > { %p2479_p2 = pmov %p2477_p8 }
  0x74   : > { %2025 = vsyncadd (%p2478_p11), [#allocation6], 4294966784 }
  0x75   : > { %2027 = dma.done.wait (%p2479_p2), [#allocation9], 512   ;;  %p2480_p6 = pmov %p2479_p2 }
  0x76   : > { %vm390_vm0 = vcmask 261120   ;;  %v2300_v0 = vld [vmem:[%s332_s14] sm:$0xff]  ;;  %v430_v7 = vld [vmem:[#allocation7 + $0x18] sm:$0xff]  ;;  %v2056_v8 = vmov 0.0   ;;  %v429_v9 = vld [vmem:[#allocation7 + $0x10] sm:$0xff]  ;;  %vm2057_vm1 = vmmov 0  }
  0x77   : > { %2029 = vsyncadd (%p2480_p6), [#allocation9], 4294966784  ;;  %v391_v1 = vsel %vm390_vm0, %v2300_v0, 0.0  ;;  %1686 = vmatprep.subr.mxu0 %v2056_v8  ;;  %1694 = vmatprep.mubr.msk.f32.mxu0 %vm2057_vm1, %v2056_v8  ;;  %v428_v10 = vld [vmem:[#allocation7 + $0x8] sm:$0xff]  ;;  %v427_v11 = vld [vmem:[#allocation7] sm:$0xff]  ;;  %s2058_s15 = smov 120  }
  0x78   : > { %392 = vadd.xlane.f32.xlu0 %v391_v1  ;;  %1687 = vmatpush3.msra.mxu0 %v430_v7  ;;  %v1631_v20 = vld [vmem:[%s2447_s2] ss:$0 sm:$0xff]  ;;  %s2059_s18 = smov 96   ;;  %s2060_s23 = smov 88   ;;  %vm521_vm4 = vcmask 64512   ;;  %v511_v33 = vld [vmem:[%s341_s26] sm:$0xff] }
  0x79   : > { %1697 = vmatprep.subr.mxu1 %v2056_v8  ;;  %1688 = vmatprep.subr.mxu0 %v2056_v8  ;;  %v1632_v23 = vld [vmem:[%s2448_s3] ss:$0 sm:$0xff]  ;;  %v1635_v34 = vadd.f32 -1.0, %v511_v33  ;;  %s2061_s25 = smov 56   ;;  %s2062_s21 = smov 64  }
  0x7a   : > { %1699 = vmatprep.mubr.msk.f32.mxu1 %vm2057_vm1, %v2056_v8  ;;  %1689 = vmatpush3.msra.mxu0 %v429_v9  ;;  %v1633_v26 = vld [vmem:[%s2450_s5] ss:$0 sm:$0xff]  ;;  %s2063_s24 = smov 80   ;;  %s2064_s14 = smov 112  }
  0x7b   : > { %1690 = vmatprep.subr.mxu0 %v2056_v8  ;;  %v2346_v35 = vmul.f32 1e+09, %v1635_v34  ;;  %v514_v1 = vld [vmem:[#allocation8] sm:$0xff]  ;;  %s2065_s4 = smov 48   ;;  %s2066_s13 = smov 104  }
  0x7c   : > { %1691 = vmatpush3.msra.mxu0 %v428_v10  ;;  %s2067_s26 = smov 72   ;;  %s2068_s11 = smov 40  }
  0x7d   : > { %1692 = vmatprep.subr.mxu0 %v2056_v8  ;;  %s1654_s19 = sshll.u32 %s2136_s9, 7  ;;  %s386_s17 = scalar_lea.vmem [#allocation10], %s2278_s6 }
  0x7e   : > { %1693 = vmatpush3.msra.mxu0 %v427_v11  ;;  %s1504_s20 = sshll.u32 %s386_s17, 4  ;;  %p2481_p7 = scmp.ne.s32.totalorder %s2472_s16, 0  ;;  %s1505_s20 = int_to_ptr.vmem [resolvable:$true] %s1504_s20 }
  0x7f   : > { %1707 = vmatprep.subr.mxu0 %v2056_v8 }
 0x101   : > { %v393_v2 = vpop.xlane.xlu0 %392 }
 0x102   : > { %v395_v3 = vmul.f32 0.03125, %v393_v2  ;;  %v515_v2 = vld [vmem:[#allocation8 + $0x8] sm:$0xff] }
 0x104   : > { %v396_v4 = vsub.f32 %v2300_v0, %v395_v3 }
 0x106   : > { %v397_v5 = vmul.f32 %v396_v4, %v396_v4  ;;  %v409_v21 = vmul.f32 %v1631_v20, %v396_v4 }
 0x108   : > { %v398_v6 = vsel %vm390_vm0, %v397_v5, 0.0 }
 0x109   : > { %399 = vadd.xlane.f32.xlu0 %v398_v6 }
 0x192   : > { %v400_v12 = vpop.xlane.xlu0 %399 }
 0x193   : > { %v402_v13 = vmul.f32 0.032258064, %v400_v12 }
 0x195   : > { %1844 = vrsqrt.f32 %v402_v13  ;;  %vm412_vm2 = vcmp.eq.f32.partialorder %v402_v13, inf  ;;  %v415_v16 = vand.u32 2147483648, %v402_v13  ;;  %vm414_vm3 = vcmp.eq.f32.partialorder %v402_v13, 0.0 }
 0x1a2   : > { %v1845_v14 = vpop.eup %1844 }
 0x1a3   : > { %v411_v15 = vmul.f32 %v1845_v14, %v402_v13 }
 0x1a5   : > { %v413_v17 = vsel %vm412_vm2, %v402_v13, %v411_v15 }
 0x1a6   : > { %v416_v18 = vsel %vm414_vm3, %v415_v16, %v413_v17 }
 0x1a7   : > { %v417_v19 = vadd.f32 1e-06, %v416_v18 }
 0x1a9   : > { %1846 = vrcp.f32 %v417_v19 }
 0x1b6   : > { %v1847_v22 = vpop.eup %1846 }
 0x1b7   : > { %v419_v24 = vmul.f32 %v1847_v22, %v409_v21 }
 0x1b9   : > { %v426_v25 = vadd.f32 %v1632_v23, %v419_v24 }
 0x1bb   : > { %1695 = vmatmul.mubr.msk.f32.vlgmr.msra.gmra.mxu0 %vm390_vm0, %v426_v25 }
 0x1bc   : > { %1709 = vmatprep.mubr.msk.f32.mxu0 %vm2057_vm1, %v2056_v8 }
 0x27b   : > { %v507_v27 = vpop.f32.mrf.mxu0 }
 0x27c   : > { %v2328_v28 = vadd.f32 %v1633_v26, %v507_v27 }
 0x27d   : > { %v1696_v29 = vpop.f32.mrf.mxu0 }
 0x27e   : > { %685 = vrot.lane.b32.xlu0 %v2328_v28, %s2058_s15  ;;  %519 = vrot.lane.b32.xlu1 %v2328_v28, %s2059_s18 }
 0x282   : > { %687 = vrot.lane.b32.xlu1 %v2328_v28, %s2060_s23  ;;  %s1502_s23 = scalar_lea.hbm %s2453_s8, %s1654_s19 }
 0x2f0   : > { %v520_v30 = vpop.permute.xlu1 %519  ;;  %v686_v32 = vpop.permute.xlu0 %685 }
 0x2f1   : > { %1698 = vmatpush3.xpose.msk.msra.mxu1 %vm521_vm4, %v520_v30 }
 0x2f2   : > { %1702 = vmatprep.subr.mxu1 %v2056_v8 }
 0x2f4   : > { %1700 = vmatmul.mubr.msk.f32.vlgmr.msra.gmra.mxu1 %vm521_vm4, %v2328_v28  ;;  %v688_v31 = vpop.permute.xlu1 %687 }
 0x2f5   : > { %1708 = vmatpush3.xpose.msk.msra.mxu0 %vm521_vm4, %v688_v31  ;;  %1704 = vmatprep.mubr.msk.f32.mxu1 %vm2057_vm1, %v2056_v8 }
 0x2f6   : > { %1717 = vmatprep.subr.mxu0 %v2056_v8 }
 0x2f8   : > { %1710 = vmatmul.mubr.msk.f32.vlgmr.msra.gmra.mxu0 %vm521_vm4, %v686_v32  ;;  %v516_v32 = vld [vmem:[#allocation8 + $0x10] sm:$0xff] }
 0x2f9   : > { %1719 = vmatprep.mubr.msk.f32.mxu0 %vm2057_vm1, %v2056_v8  ;;  %1718 = vmatpush3.msra.mxu0 %v515_v2 }
 0x2fa   : > { %1727 = vmatprep.subr.mxu0 %v2056_v8 }
 0x3b4   : > { %v592_v36 = vpop.f32.mrf.mxu1 }
 0x3b5   : > { %v596_v37 = vmul.f32 0.35355338, %v592_v36 }
 0x3b6   : > { %v1701_v38 = vpop.f32.mrf.mxu1 }
 0x3b7   : > { %v597_v39 = vadd.f32 %v596_v37, %v2346_v35 }
 0x3b8   : > { %v759_v40 = vpop.f32.mrf.mxu0 }
 0x3b9   : > { %v763_v41 = vmul.f32 0.35355338, %v759_v40  ;;  %v598_v42 = vsel %vm521_vm4, %v597_v39, -inf }
 0x3ba   : > { %599 = vmax.xlane.f32.xlu1 %v598_v42  ;;  %v1711_v43 = vpop.f32.mrf.mxu0 }
 0x3bb   : > { %v764_v44 = vadd.f32 %v763_v41, %v2346_v35 }
 0x3bd   : > { %v765_v45 = vsel %vm521_vm4, %v764_v44, -inf }
 0x3be   : > { %766 = vmax.xlane.f32.xlu0 %v765_v45 }
 0x3d4   : > { %776 = vrot.lane.b32.xlu0 %v2328_v28, %s2061_s25  ;;  %s1491_s25 = scalar_lea.sflag [#allocation4], %s2275_s22 }
 0x443   : > { %v600_v46 = vpop.xlane.xlu1 %599 }
 0x444   : > { %v601_v47 = vsub.f32 %v597_v39, %v600_v46  ;;  %v517_v46 = vld [vmem:[#allocation8 + $0x18] sm:$0xff] }
 0x446   : > { %v602_v48 = vmul.f32 1.442695, %v601_v47 }
 0x447   : > { %v767_v49 = vpop.xlane.xlu0 %766 }
 0x448   : > { %1848 = vpow2.f32 %v602_v48  ;;  %v768_v50 = vsub.f32 %v764_v44, %v767_v49 }
 0x44a   : > { %v769_v51 = vmul.f32 1.442695, %v768_v50 }
 0x44b   : > { %v777_v61 = vpop.permute.xlu0 %776 }
 0x44c   : > { %1850 = vpow2.f32 %v769_v51 }
 0x455   : > { %v1849_v52 = vpop.eup %1848 }
 0x456   : > { %v604_v53 = vsel %vm521_vm4, %v1849_v52, 0.0 }
 0x457   : > { %605 = vadd.xlane.f32.xlu1 %v604_v53 }
 0x459   : > { %v1851_v54 = vpop.eup %1850 }
 0x45a   : > { %v771_v55 = vsel %vm521_vm4, %v1851_v54, 0.0 }
 0x45b   : > { %772 = vadd.xlane.f32.xlu1 %v771_v55 }
 0x46c   : > { %609 = vrot.lane.b32.xlu1 %v2328_v28, %s2062_s21  ;;  %s1972_s21 = scalar_lea.vmem %s1505_s20, 128 }
 0x46d   : > { %p1973_p12 = scmp.ne.s32.totalorder %s1505_s20, %s1972_s21 }
 0x46f   : > { %p1974_p9 = pnand %p1973_p12, %p2481_p7 }
 0x470   : > { %1000 = vrot.lane.b32.xlu1 %v2328_v28, %s2063_s24  ;;  %s2069_s24 = smov [#allocation10]  }
 0x471   : > { %p1975_p13 = pneg %p1974_p9  ;;  %s1976_s9 = sshll.u32 %s2069_s24, 4  ;;  %s1977_s9 = int_to_ptr.vmem [resolvable:$false] %s1976_s9 }
 0x472   : > { %s1978_s6 = scalar_lea.vmem %s1977_s9, 256  ;;  %p1979_p5 = scmp.lt.s32.totalorder %s1505_s20, %s1977_s9 }
 0x473   : > { %p1980_p1 = scmp.lt.s32.totalorder %s1978_s6, %s1972_s21 }
 0x474   : > { %998 = vrot.lane.b32.xlu1 %v2328_v28, %s2064_s14 }
 0x475   : > { %p1981_p3 = por %p1980_p1, %p1979_p5 }
 0x477   : > { %p1982_p4 = pnand %p1981_p3, %p1975_p13 }
 0x4e0   : > { %v606_v56 = vpop.xlane.xlu1 %605 }
 0x4e1   : > { %1852 = vrcp.f32 %v606_v56 }
 0x4e4   : > { %v773_v57 = vpop.xlane.xlu1 %772 }
 0x4e5   : > { %1854 = vrcp.f32 %v773_v57 }
 0x4e8   : > { %v610_v58 = vpop.permute.xlu1 %609 }
 0x4e9   : > { %1703 = vmatpush3.msra.mxu1 %v610_v58 }
 0x4ea   : > { %1712 = vmatprep.subr.mxu1 %v2056_v8 }
 0x4ec   : > { %v1001_v4 = vpop.permute.xlu1 %1000 }
 0x4ee   : > { %v1853_v59 = vpop.eup %1852 }
 0x4ef   : > { %v608_v60 = vmul.f32 %v1853_v59, %v1849_v52 }
 0x4f0   : > { %v999_v9 = vpop.permute.xlu1 %998 }
 0x4f1   : > { %1705 = vmatmul.mubr.msk.f32.vlgmr.msra.gmra.mxu1 %vm521_vm4, %v608_v60 }
 0x4f2   : > { %v1855_v62 = vpop.eup %1854  ;;  %1713 = vmatpush3.msra.mxu1 %v777_v61  ;;  %1714 = vmatprep.mubr.msk.f32.mxu1 %vm2057_vm1, %v2056_v8 }
 0x4f3   : > { %v775_v63 = vmul.f32 %v1855_v62, %v1851_v54  ;;  %1722 = vmatprep.subr.mxu1 %v2056_v8  ;;  %v1652_v54 = vld [vmem:[%s2452_s7] ss:$0 sm:$0xff] }
 0x4f5   : > { %1715 = vmatmul.mubr.msk.f32.vlgmr.msra.gmra.mxu1 %vm521_vm4, %v775_v63 }
 0x4f6   : > { %1724 = vmatprep.mubr.msk.f32.mxu1 %vm2057_vm1, %v2056_v8  ;;  %1723 = vmatpush3.msra.mxu1 %v514_v1 }
 0x4f7   : > { %1732 = vmatprep.subr.mxu1 %v2056_v8 }
 0x5b1   : > { %v681_v3 = vpop.f32.mrf.mxu1 }
 0x5b2   : > { %1725 = vmatmul.mubr.msk.f32.vlgmr.msra.gmra.mxu1 %vm521_vm4, %v681_v3 }
 0x5b3   : > { %v1706_v5 = vpop.f32.mrf.mxu1  ;;  %1734 = vmatprep.mubr.msk.f32.mxu1 %vm2057_vm1, %v2056_v8 }
 0x5b5   : > { %v848_v6 = vpop.f32.mrf.mxu1 }
 0x5b6   : > { %1720 = vmatmul.mubr.msk.f32.vlgmr.msra.gmra.mxu0 %vm521_vm4, %v848_v6 }
 0x5b7   : > { %1728 = vmatpush3.xpose.msk.msra.mxu0 %vm521_vm4, %v1001_v4  ;;  %v1716_v7 = vpop.f32.mrf.mxu1  ;;  %1729 = vmatprep.mubr.msk.f32.mxu0 %vm2057_vm1, %v2056_v8 }
 0x5b8   : > { %1737 = vmatprep.subr.mxu0 %v2056_v8 }
 0x5ba   : > { %1730 = vmatmul.mubr.msk.f32.vlgmr.msra.gmra.mxu0 %vm521_vm4, %v999_v9 }
 0x5bb   : > { %1739 = vmatprep.mubr.msk.f32.mxu0 %vm2057_vm1, %v2056_v8  ;;  %1738 = vmatpush3.msra.mxu0 %v516_v32 }
 0x5bc   : > { %1747 = vmatprep.subr.mxu0 %v2056_v8 }
 0x672   : > { %v994_v10 = vpop.f32.mrf.mxu1 }
 0x674   : > { %v1726_v11 = vpop.f32.mrf.mxu1 }
 0x676   : > { %v921_v12 = vpop.f32.mrf.mxu0 }
 0x677   : > { %v995_v13 = vadd.f32 %v994_v10, %v921_v12 }
 0x678   : > { %v1721_v14 = vpop.f32.mrf.mxu0 }
 0x67a   : > { %v1072_v15 = vpop.f32.mrf.mxu0 }
 0x67b   : > { %v1076_v16 = vmul.f32 0.35355338, %v1072_v15 }
 0x67c   : > { %v1731_v17 = vpop.f32.mrf.mxu0 }
 0x67d   : > { %v1077_v18 = vadd.f32 %v1076_v16, %v2346_v35 }
 0x67f   : > { %v1078_v19 = vsel %vm521_vm4, %v1077_v18, -inf }
 0x680   : > { %1079 = vmax.xlane.f32.xlu1 %v1078_v19 }
 0x691   : > { %1089 = vrot.lane.b32.xlu1 %v2328_v28, %s2065_s4 }
 0x695   : > { %1239 = vrot.lane.b32.xlu1 %v2328_v28, %s2066_s13 }
 0x709   : > { %v1080_v20 = vpop.xlane.xlu1 %1079 }
 0x70a   : > { %v1081_v21 = vsub.f32 %v1077_v18, %v1080_v20 }
 0x70c   : > { %v1082_v22 = vmul.f32 1.442695, %v1081_v21 }
 0x70d   : > { %v1090_v23 = vpop.permute.xlu1 %1089 }
 0x70e   : > { %1856 = vpow2.f32 %v1082_v22  ;;  %1733 = vmatpush3.msra.mxu1 %v1090_v23 }
 0x70f   : > { %1742 = vmatprep.subr.mxu1 %v2056_v8 }
 0x711   : > { %v1240_v31 = vpop.permute.xlu1 %1239 }
 0x71b   : > { %v1857_v24 = vpop.eup %1856 }
 0x71c   : > { %v1084_v25 = vsel %vm521_vm4, %v1857_v24, 0.0 }
 0x71d   : > { %1085 = vadd.xlane.f32.xlu0 %v1084_v25 }
 0x733   : > { %1241 = vrot.lane.b32.xlu0 %v2328_v28, %s2067_s26 }
 0x7a6   : > { %v1086_v26 = vpop.xlane.xlu0 %1085 }
 0x7a7   : > { %1858 = vrcp.f32 %v1086_v26 }
 0x7aa   : > { %v1242_v30 = vpop.permute.xlu0 %1241 }
 0x7b4   : > { %v1859_v27 = vpop.eup %1858 }
 0x7b5   : > { %v1088_v29 = vmul.f32 %v1859_v27, %v1857_v24 }
 0x7b7   : > { %1735 = vmatmul.mubr.msk.f32.vlgmr.msra.gmra.mxu1 %vm521_vm4, %v1088_v29 }
 0x7b8   : > { %1743 = vmatpush3.xpose.msk.msra.mxu1 %vm521_vm4, %v1242_v30  ;;  %1744 = vmatprep.mubr.msk.f32.mxu1 %vm2057_vm1, %v2056_v8 }
 0x7b9   : > { %1752 = vmatprep.subr.mxu1 %v2056_v8 }
 0x7bb   : > { %1745 = vmatmul.mubr.msk.f32.vlgmr.msra.gmra.mxu1 %vm521_vm4, %v1240_v31 }
 0x7bc   : > { %1754 = vmatprep.mubr.msk.f32.mxu1 %vm2057_vm1, %v2056_v8  ;;  %1753 = vmatpush3.msra.mxu1 %v517_v46 }
 0x877   : > { %v1161_v33 = vpop.f32.mrf.mxu1 }
 0x878   : > { %1740 = vmatmul.mubr.msk.f32.vlgmr.msra.gmra.mxu0 %vm521_vm4, %v1161_v33 }
 0x879   : > { %v1736_v34 = vpop.f32.mrf.mxu1  ;;  %1749 = vmatprep.mubr.msk.f32.mxu0 %vm2057_vm1, %v2056_v8 }
 0x87b   : > { %v1313_v36 = vpop.f32.mrf.mxu1 }
 0x87c   : > { %v1317_v37 = vmul.f32 0.35355338, %v1313_v36 }
 0x87d   : > { %v1746_v38 = vpop.f32.mrf.mxu1 }
 0x87e   : > { %v1318_v39 = vadd.f32 %v1317_v37, %v2346_v35 }
 0x880   : > { %v1319_v40 = vsel %vm521_vm4, %v1318_v39, -inf }
 0x881   : > { %1320 = vmax.xlane.f32.xlu1 %v1319_v40 }
 0x90a   : > { %v1321_v41 = vpop.xlane.xlu1 %1320 }
 0x90b   : > { %v1322_v42 = vsub.f32 %v1318_v39, %v1321_v41 }
 0x90d   : > { %v1323_v43 = vmul.f32 1.442695, %v1322_v42 }
 0x90f   : > { %1860 = vpow2.f32 %v1323_v43 }
 0x91c   : > { %v1861_v44 = vpop.eup %1860 }
 0x91d   : > { %v1325_v45 = vsel %vm521_vm4, %v1861_v44, 0.0 }
 0x91e   : > { %1326 = vadd.xlane.f32.xlu0 %v1325_v45 }
 0x934   : > { %1330 = vrot.lane.b32.xlu0 %v2328_v28, %s2068_s11 }
 0x938   : > { %v1234_v8 = vpop.f32.mrf.mxu0 }
 0x939   : > { %v1238_v47 = vadd.f32 %v1234_v8, %v995_v13 }
 0x93a   : > { %v1741_v35 = vpop.f32.mrf.mxu0 }
 0x9a7   : > { %v1327_v48 = vpop.xlane.xlu0 %1326 }
 0x9a8   : > { %1862 = vrcp.f32 %v1327_v48 }
 0x9ab   : > { %v1331_v49 = vpop.permute.xlu0 %1330 }
 0x9ac   : > { %1748 = vmatpush3.msra.mxu0 %v1331_v49 }
 0x9b5   : > { %v1863_v50 = vpop.eup %1862 }
 0x9b6   : > { %v1329_v51 = vmul.f32 %v1863_v50, %v1861_v44 }
 0x9b8   : > { %1750 = vmatmul.mubr.msk.f32.vlgmr.msra.gmra.mxu0 %vm521_vm4, %v1329_v51 }
 0xa78   : > { %v1402_v52 = vpop.f32.mrf.mxu0 }
 0xa79   : > { %1755 = vmatmul.mubr.msk.f32.vlgmr.msra.gmra.mxu1 %vm521_vm4, %v1402_v52 }
 0xa7a   : > { %v1751_v28 = vpop.f32.mrf.mxu0 }
 0xb39   : > { %v1475_v53 = vpop.f32.mrf.mxu1 }
 0xb3a   : > { %v1479_v55 = vadd.f32 %v1475_v53, %v1238_v47 }
 0xb3b   : > { %v1756_v56 = vpop.f32.mrf.mxu1 }
 0xb3c   : > { %v1487_v57 = vadd.f32 %v1652_v54, %v1479_v55 }
 0xb3e   : > { %v1488_v58 = vadd.f32 %v1487_v57, %v2300_v0 }
 0xb40   : > { %1489 = vst.msk [vmem:[%s386_s17] sm:$0xff] %vm390_vm0, %v1488_v58 }
 0xb41   : > { %1985 = shalt.err (!%p1982_p4)
}
 0xb42   : > { %s1986_s14 = scalar_lea.hbm %s1502_s23, 128  ;;  %s1990_s13 = scalar_lea.hbm %s2453_s8, 256 }
 0xb43   : > { %p1987_p10 = scmp.ne.s32.totalorder %s1502_s23, %s1986_s14  ;;  %p1991_p11 = scmp.lt.s32.totalorder %s1502_s23, %s2453_s8 }
 0xb44   : > { %p1992_p2 = scmp.lt.s32.totalorder %s1990_s13, %s1986_s14 }
 0xb45   : > { %p1988_p0 = pnand %p1987_p10, %p2481_p7 }
 0xb46   : > { %p1993_p6 = por %p1992_p2, %p1991_p11 }
 0xb47   : > { %p1989_p8 = pneg %p1988_p0 }
 0xb49   : > { %p1994_p12 = pnand %p1993_p6, %p1989_p8 }
 0xb4b   : > { %1997 = shalt.err (!%p1994_p12)
}
 0xb4c   : > { %1769 = dma.vmem_to_hbm [thread:$0]  (%p2481_p7), %s1505_s20, 128, %s1502_s23, %s1491_s25  }
 0xb4d PF: > { %s1516_s29 = sand.u32 1, %s2036_s27   ;;  %p2482_p9 = scmp.ne.s32.totalorder %s2465_s12, 0 }
 0xb4e   : > { %p2483_p13 = scmp.ge.s32.totalorder %s2048_s30, 2  ;;  %s1517_s10 = scalar_lea.sflag [#allocation4], %s1516_s29 }
 0xb50   : > { %p1786_p5 = pnand %p2483_p13, %p2482_p9 }
 0xb52   : > { %p1787_p1 = pneg %p1786_p5 }
 0xb54   : > { %2031 = dma.done.wait (%p1787_p1), %s1517_s10, 128  }
 0xb55   : > { %2033 = vsyncadd (%p1787_p1), %s1517_s10, 4294967168  ;;  %s2484_s30 = sld [smem:[#allocation17_spill]]  ;;  %s2487_s27 = smov %s2040_s28 }
 0xb56   : > { %s2485_s19 = sld [smem:[#allocation16_spill]] }
 0xb57   : > { %s2486_s29 = sld [smem:[#allocation18_spill]] }
 0xb5b   : > { %p25_p3 = scmp.ge.s32.totalorder %s2484_s30, 4  }
 0xb5c   : > { %s2488_s28 = smov %s2485_s19 }
 0xb5d   :  { %27 = sbr.rel (!%p25_p3) target bundleno = 11 (0xb), region = 118 }
 0xb62   :  { %1522 = vsyncpa [#allocation3], 1 }
 0xb63   :  { %1524 = vsyncpa [#allocation3 + $0x1], 1 }
 0xb64   :  { %1525 = vsyncpa [#allocation6], 1 }
 0xb65   :  { %1527 = vsyncpa [#allocation6 + $0x1], 1 }
 0xb66   :  { %1528 = vsyncpa [#allocation9], 1 }
 0xb67   :  { %1529 = vsyncpa [#allocation4], 1 }
 0xb68   :  { %1531 = vsyncpa [#allocation4 + $0x1], 1 }

</bundles_post_ra>
